<compile_context>
chip_gen: v6e
topology: v6e:2x2x1
jax: 0.10.0
libtpu: 0.0.40
codegen_flags: <defaults>
</compile_context>

<pallas_src>
import math

import jax
import jax.numpy as jnp
import numpy as np
from jax.experimental import pallas as pl
from jax.experimental.pallas import tpu as pltpu


# ----------------------------------------------------------------------------
# Generation detection: >1 TensorCore per chip -> keep directions "parallel",
# otherwise fuse the direction sum inside the kernel.
# ----------------------------------------------------------------------------
def _use_parallel_directions():
    try:
        kind = jax.devices()[0].device_kind.lower()
    except Exception:
        return False
    return any(tag in kind for tag in ("v7", "7x", "v4", "v5p"))


# ----------------------------------------------------------------------------
# Pallas kernel factory: fused bidirectional masked GRU recurrence.
# One grid step per direction (d = pl.program_id(0)); the whole T-loop runs
# inside the kernel with the hidden state resident in VMEM scratch.
# ----------------------------------------------------------------------------
def _make_bigru_kernel(fuse_sum):
    def kernel(gi_ref, lens_ref, whh_ref, bhn_ref, out_ref, hlast_ref, h_scratch):
        # gi_ref   : (T, B, 3H) bf16  x @ W_ih^T + b_ih + [b_hr, b_hz, 0], this direction
        # lens_ref : (B, 1)     int32 valid lengths (padded batch rows have length 0)
        # whh_ref  : (H, 3H)    bf16  recurrent weight (transposed), this direction
        # bhn_ref  : (1, H)     f32   n-gate recurrent bias, this direction
        # out_ref  : (T, B, H)  f32   padded outputs (fused: sum of both directions)
        # hlast_ref: (B, H)     f32   final hidden state, this direction
        # h_scratch: (B, H)     f32   VMEM-resident hidden state
        d = pl.program_id(0)
        T, B, H3 = gi_ref.shape
        H = H3 // 3

        # Hoisted loop-invariants: weight upcast, bias / lengths broadcasts (done once,
        # not once per unrolled step).
        whh = whh_ref[...].astype(jnp.float32)                              # (H, 3H)
        bhn = jnp.broadcast_to(bhn_ref[...].astype(jnp.float32), (B, H))    # (B, H)
        lens_b = jnp.broadcast_to(lens_ref[...], (B, H))                    # (B, H) int32

        h_scratch[...] = jnp.zeros_like(h_scratch)

        if fuse_sum:
            # Both directions accumulate into the same output block; zero it once.
            @pl.when(d == 0)
            def _():
                out_ref[...] = jnp.zeros_like(out_ref)

        # Hoisted direction select: forward walks t = 0..T-1, backward walks T-1..0.
        t0 = jnp.where(d == 0, 0, T - 1)
        dt = jnp.where(d == 0, 1, -1)

        def step(i, carry):
            t = t0 + i * dt
            gi = gi_ref[t].astype(jnp.float32)      # (B, 3H) dynamic first-axis load
            h = h_scratch[...]                      # (B, H) f32

            # PyTorch GRU gate equations (gate order r, z, n).  r/z biases already folded
            # into gi; only the hidden-side n bias remains (it must sit inside r * (...)).
            gh = jnp.dot(h, whh, preferred_element_type=jnp.float32)        # (B, 3H)
            rz = jax.nn.sigmoid(gi[:, : 2 * H] + gh[:, : 2 * H])            # fused r,z sigmoid
            r = rz[:, :H]
            z = rz[:, H:]
            n = jnp.tanh(gi[:, 2 * H:] + r * (gh[:, 2 * H:] + bhn))
            h_new = (1.0 - z) * n + z * h

            # packed-sequence semantics: padded steps freeze h and emit 0.
            valid = t < lens_b                                               # (B, H) bool
            h_scratch[...] = jnp.where(valid, h_new, h)
            cur = jnp.where(valid, h_new, 0.0).astype(out_ref.dtype)
            if fuse_sum:
                out_ref[t] = out_ref[t] + cur
            else:
                out_ref[t] = cur
            return carry

        jax.lax.fori_loop(0, T, step, 0, unroll=min(T, 8))
        hlast_ref[...] = h_scratch[...]

    return kernel


def bidirectional_masked_gru(gi, lens2d, whh_t, bhn):
    """gi: (2,T,B,3H) bf16, lens2d: (B,1) int32, whh_t: (2,H,3H) bf16, bhn: (2,1,H) f32.

    Returns (out, hlast) where hlast is (2,B,H) f32 and out is either (T,B,H) f32
    (direction sum fused in-kernel, single-TC parts) or (2,T,B,H) f32 (multi-TC parts)."""
    _, T, B, H3 = gi.shape
    H = H3 // 3

    parallel_dirs = _use_parallel_directions()
    fuse_sum = not parallel_dirs
    kernel = _make_bigru_kernel(fuse_sum)

    if fuse_sum:
        out_shapes = (jax.ShapeDtypeStruct((T, B, H), jnp.float32),
                      jax.ShapeDtypeStruct((2, B, H), jnp.float32))
        out_specs = (pl.BlockSpec((T, B, H), lambda d: (0, 0, 0)),          # shared accumulator
                     pl.BlockSpec((None, B, H), lambda d: (d, 0, 0)))
        semantics = ("arbitrary",)   # required: both d write the same output block
    else:
        out_shapes = (jax.ShapeDtypeStruct((2, T, B, H), jnp.float32),
                      jax.ShapeDtypeStruct((2, B, H), jnp.float32))
        out_specs = (pl.BlockSpec((None, T, B, H), lambda d: (d, 0, 0, 0)),
                     pl.BlockSpec((None, B, H), lambda d: (d, 0, 0)))
        semantics = ("parallel",)    # one GRU direction per TensorCore on v7x / megacore

    return pl.pallas_call(
        kernel,
        out_shape=out_shapes,
        grid_spec=pltpu.PrefetchScalarGridSpec(
            num_scalar_prefetch=0,
            grid=(2,),  # direction axis only; time runs inside the kernel
            in_specs=[
                pl.BlockSpec((None, T, B, H3), lambda d: (d, 0, 0, 0)),   # gi per direction
                pl.BlockSpec((B, 1), lambda d: (0, 0)),                   # lengths
                pl.BlockSpec((None, H, H3), lambda d: (d, 0, 0)),         # W_hh^T per direction
                pl.BlockSpec((None, 1, H), lambda d: (d, 0, 0)),          # b_hn per direction
            ],
            out_specs=out_specs,
            scratch_shapes=[pltpu.VMEM((B, H), jnp.float32)],
        ),
        compiler_params=pltpu.CompilerParams(
            dimension_semantics=semantics,
            vmem_limit_bytes=32 * 1024 * 1024,
        ),
    )(gi, lens2d, whh_t, bhn)
    # TODO(synk): for long sequences add a T-chunk grid axis ("arbitrary") carrying h in
    # scratch so the gi/out blocks fit v7x's smaller VMEM and DMA overlaps the recurrence.


# ----------------------------------------------------------------------------
# Encoder forward: embedding lookup + one fused input projection are wrapper glue,
# the serial recurrence runs in the Pallas kernel above.
# ----------------------------------------------------------------------------
@jax.jit
def encoder_forward(params, inputs_seqs, input_lens):
    emb = params["embedding"][inputs_seqs]                       # (T, B, H) f32 gather
    T, B, H = emb.shape
    B_pad = max(8, -(-B // 8) * 8)                               # fill f32 sublanes

    # One (T*B, H) x (H, 6H) matmul for both directions.  Fold b_ih and the r/z slices of
    # b_hh into its bias so nothing bias-related remains on the serial recurrence path
    # except the n-gate hidden bias (which must stay inside r * (...)).
    zeros_h = jnp.zeros((H,), jnp.float32)
    wih_cat = jnp.concatenate([params["wih_f_t"], params["wih_b_t"]], axis=1)      # (H, 6H)
    b_cat = jnp.concatenate([
        params["b_ih_f"] + jnp.concatenate([params["b_hh_f"][: 2 * H], zeros_h]),
        params["b_ih_b"] + jnp.concatenate([params["b_hh_b"][: 2 * H], zeros_h]),
    ])                                                                              # (6H,)
    gi_all = (emb.reshape(T * B, H) @ wih_cat + b_cat).reshape(T, B, 6 * H)
    gi = jnp.stack([gi_all[..., : 3 * H], gi_all[..., 3 * H:]], axis=0)             # (2,T,B,3H)
    gi = jnp.pad(gi, ((0, 0), (0, 0), (0, B_pad - B), (0, 0))).astype(jnp.bfloat16)

    whh_t = jnp.stack([params["whh_f_t"], params["whh_b_t"]], axis=0).astype(jnp.bfloat16)
    bhn = jnp.stack([params["b_hh_f"][2 * H:], params["b_hh_b"][2 * H:]], axis=0)[:, None, :]

    lens = input_lens.astype(jnp.int32)
    lens2d = jnp.pad(lens, (0, B_pad - B))[:, None]              # padded rows: length 0

    out, hlast = bidirectional_masked_gru(gi, lens2d, whh_t, bhn)
    if out.ndim == 4:                 # "parallel" variant: sum the two directions here
        out = out[0] + out[1]

    outputs = out[:, :B, :]           # (T, B, H): outputs[:,:, :H] + outputs[:,:, H:]
    hidden = hlast[:, :B, :]          # (2, B, H) = (num_layers*num_directions, B, H)
    return outputs, hidden
    # TODO(synk): dropout=0.1 in the PyTorch GRU is a no-op for num_layers=1 (no inter-layer
    # dropout) and the optional non-None initial hidden is not modeled (test uses default).


# ----------------------------------------------------------------------------
# Pure-JAX reference (same math, same bf16 storage points) for a correctness check
# ----------------------------------------------------------------------------
def _q_bf16(x):
    return x.astype(jnp.bfloat16).astype(jnp.float32)


def _ref_gru_dir(emb, lens, wih_t, whh_t, b_ih, b_hh, reverse):
    T, B, H = emb.shape
    bias = b_ih + jnp.concatenate([b_hh[: 2 * H], jnp.zeros((H,), jnp.float32)])
    gi = _q_bf16((emb.reshape(T * B, H) @ wih_t + bias).reshape(T, B, 3 * H))
    whh = _q_bf16(whh_t)
    b_hn = b_hh[2 * H:]

    tids = jnp.arange(T, dtype=jnp.int32)
    gi_seq, t_seq = (gi[::-1], tids[::-1]) if reverse else (gi, tids)

    def step(h, xt):
        g, t = xt
        gh = h @ whh
        rz = jax.nn.sigmoid(g[:, : 2 * H] + gh[:, : 2 * H])
        r, z = rz[:, :H], rz[:, H:]
        n = jnp.tanh(g[:, 2 * H:] + r * (gh[:, 2 * H:] + b_hn))
        h_new = (1.0 - z) * n + z * h
        valid = (t < lens)[:, None]
        return jnp.where(valid, h_new, h), jnp.where(valid, h_new, 0.0)

    h_last, outs = jax.lax.scan(step, jnp.zeros((B, H), jnp.float32), (gi_seq, t_seq))
    if reverse:
        outs = outs[::-1]
    return outs, h_last


def ref_encoder_forward(params, inputs_seqs, input_lens):
    emb = params["embedding"][inputs_seqs]
    lens = input_lens.astype(jnp.int32)
    out_f, h_f = _ref_gru_dir(emb, lens, params["wih_f_t"], params["whh_f_t"],
                              params["b_ih_f"], params["b_hh_f"], reverse=False)
    out_b, h_b = _ref_gru_dir(emb, lens, params["wih_b_t"], params["whh_b_t"],
                              params["b_ih_b"], params["b_hh_b"], reverse=True)
    return out_f + out_b, jnp.stack([h_f, h_b], axis=0)


# ----------------------------------------------------------------------------
if __name__ == "__main__":
    vocab_size = 16   # Encoder input_size
    hidden = 32       # Encoder hidden_size
    T, B = 8, 4       # seq len, batch

    key = jax.random.PRNGKey(0)
    ks = jax.random.split(key, 10)
    scale = 1.0 / math.sqrt(hidden)

    params = {
        "embedding": jax.random.normal(ks[0], (vocab_size, hidden), jnp.float32),
        # forward-direction GRU params (stored transposed: (H, 3H); gate order r, z, n)
        "wih_f_t": jax.random.uniform(ks[1], (hidden, 3 * hidden), jnp.float32, -scale, scale),
        "whh_f_t": jax.random.uniform(ks[2], (hidden, 3 * hidden), jnp.float32, -scale, scale),
        "b_ih_f": jax.random.uniform(ks[3], (3 * hidden,), jnp.float32, -scale, scale),
        "b_hh_f": jax.random.uniform(ks[4], (3 * hidden,), jnp.float32, -scale, scale),
        # backward-direction GRU params
        "wih_b_t": jax.random.uniform(ks[5], (hidden, 3 * hidden), jnp.float32, -scale, scale),
        "whh_b_t": jax.random.uniform(ks[6], (hidden, 3 * hidden), jnp.float32, -scale, scale),
        "b_ih_b": jax.random.uniform(ks[7], (3 * hidden,), jnp.float32, -scale, scale),
        "b_hh_b": jax.random.uniform(ks[8], (3 * hidden,), jnp.float32, -scale, scale),
    }

    inputs_seqs = jax.random.randint(ks[9], (T, B), 0, vocab_size, dtype=jnp.int32)
    # pack_padded_sequence default expects lengths sorted descending
    input_lens = jnp.array([8, 6, 5, 3], dtype=jnp.int32)

    outputs, hidden_state = encoder_forward(params, inputs_seqs, input_lens)
    outputs, hidden_state = jax.block_until_ready((outputs, hidden_state))

    ref_out, ref_hidden = ref_encoder_forward(params, inputs_seqs, input_lens)
    assert outputs.shape == (T, B, hidden)
    assert hidden_state.shape == (2, B, hidden)
    # tolerance reflects bfloat16 storage of gi / W_hh (~2^-8 relative precision)
    assert np.allclose(np.asarray(outputs), np.asarray(ref_out), atol=1e-2, rtol=1e-2)
    assert np.allclose(np.asarray(hidden_state), np.asarray(ref_hidden), atol=1e-2, rtol=1e-2)

    print("KERNEL_OK")
</pallas_src>

<mosaic_0001>
module attributes {stable_mosaic.version = 11 : i64} {
  func.func @kernel(%arg0: i32, %arg1: memref<1x8x8x96xbf16, #tpu.memory_space<vmem>>, %arg2: memref<8x1xi32, #tpu.memory_space<vmem>>, %arg3: memref<1x32x96xbf16, #tpu.memory_space<vmem>>, %arg4: memref<1x1x32xf32, #tpu.memory_space<vmem>>, %arg5: memref<8x8x32xf32, #tpu.memory_space<vmem>>, %arg6: memref<1x8x32xf32, #tpu.memory_space<vmem>>, %arg7: memref<8x32xf32, #tpu.memory_space<vmem>>) attributes {dimension_semantics = [#tpu.dimension_semantics<arbitrary>], iteration_bounds = array<i64: 2>, scalar_prefetch = 0 : i64, scratch_operands = 1 : i64, tpu.core_type = #tpu.core_type<tc>, window_params = [{transform_indices = @transform_0, window_bounds = array<i64: 1, 8, 8, 96>}, {pipeline_mode = #tpu.pipeline_mode<synchronous>, transform_indices = @transform_1, window_bounds = array<i64: 8, 1>}, {transform_indices = @transform_2, window_bounds = array<i64: 1, 32, 96>}, {transform_indices = @transform_3, window_bounds = array<i64: 1, 1, 32>}, {pipeline_mode = #tpu.pipeline_mode<synchronous>, transform_indices = @transform_4, window_bounds = array<i64: 8, 8, 32>}, {transform_indices = @transform_5, window_bounds = array<i64: 1, 8, 32>}]} {
    %c0 = arith.constant 0 : index
    %c0_0 = arith.constant 0 : index
    %c0_1 = arith.constant 0 : index
    %0 = vector.load %arg3[%c0, %c0_0, %c0_1] : memref<1x32x96xbf16, #tpu.memory_space<vmem>>, vector<1x32x96xbf16>
    %1 = vector.shape_cast %0 : vector<1x32x96xbf16> to vector<32x96xbf16>
    %2 = arith.extf %1 : vector<32x96xbf16> to vector<32x96xf32>
    %c0_2 = arith.constant 0 : index
    %c0_3 = arith.constant 0 : index
    %c0_4 = arith.constant 0 : index
    %3 = vector.load %arg4[%c0_2, %c0_3, %c0_4] : memref<1x1x32xf32, #tpu.memory_space<vmem>>, vector<1x1x32xf32>
    %4 = vector.shape_cast %3 : vector<1x1x32xf32> to vector<1x32xf32>
    %5 = vector.shape_cast %4 : vector<1x32xf32> to vector<1x32xf32>
    %6 = vector.broadcast %5 : vector<1x32xf32> to vector<8x32xf32>
    %c0_5 = arith.constant 0 : index
    %c0_6 = arith.constant 0 : index
    %7 = vector.load %arg2[%c0_5, %c0_6] : memref<8x1xi32, #tpu.memory_space<vmem>>, vector<8x1xi32>
    %8 = vector.shape_cast %7 : vector<8x1xi32> to vector<8x1xi32>
    %9 = vector.broadcast %8 : vector<8x1xi32> to vector<8x32xi32>
    %cst = arith.constant 0.000000e+00 : f32
    %10 = vector.broadcast %cst : f32 to vector<8x32xf32>
    %c0_7 = arith.constant 0 : index
    %c0_8 = arith.constant 0 : index
    %11 = vector.load %arg7[%c0_7, %c0_8] : memref<8x32xf32, #tpu.memory_space<vmem>>, vector<8x32xf32>
    tpu.vector_store %arg7[%c0_7, %c0_8], %10 {strides = array<i32>} : memref<8x32xf32, #tpu.memory_space<vmem>>, vector<8x32xf32>,
    %c0_i32 = arith.constant 0 : i32
    %12 = arith.cmpi eq, %arg0, %c0_i32 : i32
    %13 = arith.extui %12 : i1 to i32
    %c0_i32_9 = arith.constant 0 : i32
    %14 = arith.cmpi ne, %13, %c0_i32_9 : i32
    scf.if %14 {
      %cst_141 = arith.constant 0.000000e+00 : f32
      %367 = vector.broadcast %cst_141 : f32 to vector<8x8x32xf32>
      %c0_142 = arith.constant 0 : index
      %c0_143 = arith.constant 0 : index
      %c0_144 = arith.constant 0 : index
      %368 = vector.load %arg5[%c0_142, %c0_143, %c0_144] : memref<8x8x32xf32, #tpu.memory_space<vmem>>, vector<8x8x32xf32>
      tpu.vector_store %arg5[%c0_142, %c0_143, %c0_144], %367 {strides = array<i32>} : memref<8x8x32xf32, #tpu.memory_space<vmem>>, vector<8x8x32xf32>,
    } else {
    }
    %c0_i32_10 = arith.constant 0 : i32
    %15 = arith.cmpi eq, %arg0, %c0_i32_10 : i32
    %c0_i32_11 = arith.constant 0 : i32
    %c7_i32 = arith.constant 7 : i32
    %16 = arith.select %15, %c0_i32_11, %c7_i32 : i32
    %c0_i32_12 = arith.constant 0 : i32
    %17 = arith.cmpi eq, %arg0, %c0_i32_12 : i32
    %c1_i32 = arith.constant 1 : i32
    %c-1_i32 = arith.constant -1 : i32
    %18 = arith.select %17, %c1_i32, %c-1_i32 : i32
    %c0_i32_13 = arith.constant 0 : i32
    %19 = arith.muli %c0_i32_13, %18 : i32
    %20 = arith.addi %16, %19 : i32
    %c0_14 = arith.constant 0 : index
    %21 = arith.index_cast %20 : i32 to index
    %c0_15 = arith.constant 0 : index
    %c0_16 = arith.constant 0 : index
    %22 = vector.load %arg1[%c0_14, %21, %c0_15, %c0_16] : memref<1x8x8x96xbf16, #tpu.memory_space<vmem>>, vector<1x1x8x96xbf16>
    %23 = vector.shape_cast %22 : vector<1x1x8x96xbf16> to vector<8x96xbf16>
    %24 = arith.extf %23 : vector<8x96xbf16> to vector<8x96xf32>
    %c0_17 = arith.constant 0 : index
    %c0_18 = arith.constant 0 : index
    %25 = vector.load %arg7[%c0_17, %c0_18] : memref<8x32xf32, #tpu.memory_space<vmem>>, vector<8x32xf32>
    %cst_19 = arith.constant dense<0.000000e+00> : vector<8x96xf32>
    %26 = tpu.matmul %25, %2, %cst_19 {dimension_numbers = #tpu.dot_dimension_numbers<[1], [0], [0], [1], [0, 0, 1, 1], [], []>} : vector<8x32xf32>, vector<32x96xf32>, vector<8x96xf32> -> vector<8x96xf32>
    %27 = vector.extract_strided_slice %24 {offsets = [0, 0], sizes = [8, 64], strides = [1, 1]} : vector<8x96xf32> to vector<8x64xf32>
    %28 = vector.extract_strided_slice %26 {offsets = [0, 0], sizes = [8, 64], strides = [1, 1]} : vector<8x96xf32> to vector<8x64xf32>
    %29 = arith.addf %27, %28 : vector<8x64xf32>
    %30 = arith.negf %29 : vector<8x64xf32>
    %31 = math.exp %30 : vector<8x64xf32>
    %cst_20 = arith.constant 1.000000e+00 : f32
    %32 = vector.broadcast %cst_20 : f32 to vector<8x64xf32>
    %33 = arith.addf %32, %31 : vector<8x64xf32>
    %34 = arith.divf %32, %33 : vector<8x64xf32>
    %35 = vector.extract_strided_slice %34 {offsets = [0, 0], sizes = [8, 32], strides = [1, 1]} : vector<8x64xf32> to vector<8x32xf32>
    %36 = vector.extract_strided_slice %34 {offsets = [0, 32], sizes = [8, 32], strides = [1, 1]} : vector<8x64xf32> to vector<8x32xf32>
    %37 = vector.extract_strided_slice %24 {offsets = [0, 64], sizes = [8, 32], strides = [1, 1]} : vector<8x96xf32> to vector<8x32xf32>
    %38 = vector.extract_strided_slice %26 {offsets = [0, 64], sizes = [8, 32], strides = [1, 1]} : vector<8x96xf32> to vector<8x32xf32>
    %39 = arith.addf %38, %6 : vector<8x32xf32>
    %40 = arith.mulf %35, %39 : vector<8x32xf32>
    %41 = arith.addf %37, %40 : vector<8x32xf32>
    %42 = math.tanh %41 : vector<8x32xf32>
    %cst_21 = arith.constant 1.000000e+00 : f32
    %43 = vector.broadcast %cst_21 : f32 to vector<8x32xf32>
    %44 = arith.subf %43, %36 : vector<8x32xf32>
    %45 = arith.mulf %44, %42 : vector<8x32xf32>
    %46 = arith.mulf %36, %25 : vector<8x32xf32>
    %47 = arith.addf %45, %46 : vector<8x32xf32>
    %48 = vector.broadcast %20 : i32 to vector<8x32xi32>
    %49 = arith.cmpi slt, %48, %9 : vector<8x32xi32>
    %50 = arith.select %49, %47, %25 : vector<8x32xi1>, vector<8x32xf32>
    %c0_22 = arith.constant 0 : index
    %c0_23 = arith.constant 0 : index
    %51 = vector.load %arg7[%c0_22, %c0_23] : memref<8x32xf32, #tpu.memory_space<vmem>>, vector<8x32xf32>
    tpu.vector_store %arg7[%c0_22, %c0_23], %50 {strides = array<i32>} : memref<8x32xf32, #tpu.memory_space<vmem>>, vector<8x32xf32>,
    %cst_24 = arith.constant 0.000000e+00 : f32
    %52 = vector.broadcast %cst_24 : f32 to vector<8x32xf32>
    %53 = arith.select %49, %47, %52 : vector<8x32xi1>, vector<8x32xf32>
    %54 = arith.index_cast %20 : i32 to index
    %c0_25 = arith.constant 0 : index
    %c0_26 = arith.constant 0 : index
    %55 = vector.load %arg5[%54, %c0_25, %c0_26] : memref<8x8x32xf32, #tpu.memory_space<vmem>>, vector<1x8x32xf32>
    %56 = vector.shape_cast %55 : vector<1x8x32xf32> to vector<8x32xf32>
    %57 = arith.addf %56, %53 : vector<8x32xf32>
    %58 = arith.index_cast %20 : i32 to index
    %c0_27 = arith.constant 0 : index
    %c0_28 = arith.constant 0 : index
    %59 = vector.load %arg5[%58, %c0_27, %c0_28] : memref<8x8x32xf32, #tpu.memory_space<vmem>>, vector<1x8x32xf32>
    %60 = vector.shape_cast %59 : vector<1x8x32xf32> to vector<8x32xf32>
    %61 = vector.shape_cast %57 : vector<8x32xf32> to vector<1x8x32xf32>
    tpu.vector_store %arg5[%58, %c0_27, %c0_28], %61 {strides = array<i32>} : memref<8x8x32xf32, #tpu.memory_space<vmem>>, vector<1x8x32xf32>,
    %c1_i32_29 = arith.constant 1 : i32
    %62 = arith.muli %c1_i32_29, %18 : i32
    %63 = arith.addi %16, %62 : i32
    %c0_30 = arith.constant 0 : index
    %64 = arith.index_cast %63 : i32 to index
    %c0_31 = arith.constant 0 : index
    %c0_32 = arith.constant 0 : index
    %65 = vector.load %arg1[%c0_30, %64, %c0_31, %c0_32] : memref<1x8x8x96xbf16, #tpu.memory_space<vmem>>, vector<1x1x8x96xbf16>
    %66 = vector.shape_cast %65 : vector<1x1x8x96xbf16> to vector<8x96xbf16>
    %67 = arith.extf %66 : vector<8x96xbf16> to vector<8x96xf32>
    %c0_33 = arith.constant 0 : index
    %c0_34 = arith.constant 0 : index
    %68 = vector.load %arg7[%c0_33, %c0_34] : memref<8x32xf32, #tpu.memory_space<vmem>>, vector<8x32xf32>
    %cst_35 = arith.constant dense<0.000000e+00> : vector<8x96xf32>
    %69 = tpu.matmul %68, %2, %cst_35 {dimension_numbers = #tpu.dot_dimension_numbers<[1], [0], [0], [1], [0, 0, 1, 1], [], []>} : vector<8x32xf32>, vector<32x96xf32>, vector<8x96xf32> -> vector<8x96xf32>
    %70 = vector.extract_strided_slice %67 {offsets = [0, 0], sizes = [8, 64], strides = [1, 1]} : vector<8x96xf32> to vector<8x64xf32>
    %71 = vector.extract_strided_slice %69 {offsets = [0, 0], sizes = [8, 64], strides = [1, 1]} : vector<8x96xf32> to vector<8x64xf32>
    %72 = arith.addf %70, %71 : vector<8x64xf32>
    %73 = arith.negf %72 : vector<8x64xf32>
    %74 = math.exp %73 : vector<8x64xf32>
    %cst_36 = arith.constant 1.000000e+00 : f32
    %75 = vector.broadcast %cst_36 : f32 to vector<8x64xf32>
    %76 = arith.addf %75, %74 : vector<8x64xf32>
    %77 = arith.divf %75, %76 : vector<8x64xf32>
    %78 = vector.extract_strided_slice %77 {offsets = [0, 0], sizes = [8, 32], strides = [1, 1]} : vector<8x64xf32> to vector<8x32xf32>
    %79 = vector.extract_strided_slice %77 {offsets = [0, 32], sizes = [8, 32], strides = [1, 1]} : vector<8x64xf32> to vector<8x32xf32>
    %80 = vector.extract_strided_slice %67 {offsets = [0, 64], sizes = [8, 32], strides = [1, 1]} : vector<8x96xf32> to vector<8x32xf32>
    %81 = vector.extract_strided_slice %69 {offsets = [0, 64], sizes = [8, 32], strides = [1, 1]} : vector<8x96xf32> to vector<8x32xf32>
    %82 = arith.addf %81, %6 : vector<8x32xf32>
    %83 = arith.mulf %78, %82 : vector<8x32xf32>
    %84 = arith.addf %80, %83 : vector<8x32xf32>
    %85 = math.tanh %84 : vector<8x32xf32>
    %cst_37 = arith.constant 1.000000e+00 : f32
    %86 = vector.broadcast %cst_37 : f32 to vector<8x32xf32>
    %87 = arith.subf %86, %79 : vector<8x32xf32>
    %88 = arith.mulf %87, %85 : vector<8x32xf32>
    %89 = arith.mulf %79, %68 : vector<8x32xf32>
    %90 = arith.addf %88, %89 : vector<8x32xf32>
    %91 = vector.broadcast %63 : i32 to vector<8x32xi32>
    %92 = arith.cmpi slt, %91, %9 : vector<8x32xi32>
    %93 = arith.select %92, %90, %68 : vector<8x32xi1>, vector<8x32xf32>
    %c0_38 = arith.constant 0 : index
    %c0_39 = arith.constant 0 : index
    %94 = vector.load %arg7[%c0_38, %c0_39] : memref<8x32xf32, #tpu.memory_space<vmem>>, vector<8x32xf32>
    tpu.vector_store %arg7[%c0_38, %c0_39], %93 {strides = array<i32>} : memref<8x32xf32, #tpu.memory_space<vmem>>, vector<8x32xf32>,
    %cst_40 = arith.constant 0.000000e+00 : f32
    %95 = vector.broadcast %cst_40 : f32 to vector<8x32xf32>
    %96 = arith.select %92, %90, %95 : vector<8x32xi1>, vector<8x32xf32>
    %97 = arith.index_cast %63 : i32 to index
    %c0_41 = arith.constant 0 : index
    %c0_42 = arith.constant 0 : index
    %98 = vector.load %arg5[%97, %c0_41, %c0_42] : memref<8x8x32xf32, #tpu.memory_space<vmem>>, vector<1x8x32xf32>
    %99 = vector.shape_cast %98 : vector<1x8x32xf32> to vector<8x32xf32>
    %100 = arith.addf %99, %96 : vector<8x32xf32>
    %101 = arith.index_cast %63 : i32 to index
    %c0_43 = arith.constant 0 : index
    %c0_44 = arith.constant 0 : index
    %102 = vector.load %arg5[%101, %c0_43, %c0_44] : memref<8x8x32xf32, #tpu.memory_space<vmem>>, vector<1x8x32xf32>
    %103 = vector.shape_cast %102 : vector<1x8x32xf32> to vector<8x32xf32>
    %104 = vector.shape_cast %100 : vector<8x32xf32> to vector<1x8x32xf32>
    tpu.vector_store %arg5[%101, %c0_43, %c0_44], %104 {strides = array<i32>} : memref<8x8x32xf32, #tpu.memory_space<vmem>>, vector<1x8x32xf32>,
    %c2_i32 = arith.constant 2 : i32
    %105 = arith.muli %c2_i32, %18 : i32
    %106 = arith.addi %16, %105 : i32
    %c0_45 = arith.constant 0 : index
    %107 = arith.index_cast %106 : i32 to index
    %c0_46 = arith.constant 0 : index
    %c0_47 = arith.constant 0 : index
    %108 = vector.load %arg1[%c0_45, %107, %c0_46, %c0_47] : memref<1x8x8x96xbf16, #tpu.memory_space<vmem>>, vector<1x1x8x96xbf16>
    %109 = vector.shape_cast %108 : vector<1x1x8x96xbf16> to vector<8x96xbf16>
    %110 = arith.extf %109 : vector<8x96xbf16> to vector<8x96xf32>
    %c0_48 = arith.constant 0 : index
    %c0_49 = arith.constant 0 : index
    %111 = vector.load %arg7[%c0_48, %c0_49] : memref<8x32xf32, #tpu.memory_space<vmem>>, vector<8x32xf32>
    %cst_50 = arith.constant dense<0.000000e+00> : vector<8x96xf32>
    %112 = tpu.matmul %111, %2, %cst_50 {dimension_numbers = #tpu.dot_dimension_numbers<[1], [0], [0], [1], [0, 0, 1, 1], [], []>} : vector<8x32xf32>, vector<32x96xf32>, vector<8x96xf32> -> vector<8x96xf32>
    %113 = vector.extract_strided_slice %110 {offsets = [0, 0], sizes = [8, 64], strides = [1, 1]} : vector<8x96xf32> to vector<8x64xf32>
    %114 = vector.extract_strided_slice %112 {offsets = [0, 0], sizes = [8, 64], strides = [1, 1]} : vector<8x96xf32> to vector<8x64xf32>
    %115 = arith.addf %113, %114 : vector<8x64xf32>
    %116 = arith.negf %115 : vector<8x64xf32>
    %117 = math.exp %116 : vector<8x64xf32>
    %cst_51 = arith.constant 1.000000e+00 : f32
    %118 = vector.broadcast %cst_51 : f32 to vector<8x64xf32>
    %119 = arith.addf %118, %117 : vector<8x64xf32>
    %120 = arith.divf %118, %119 : vector<8x64xf32>
    %121 = vector.extract_strided_slice %120 {offsets = [0, 0], sizes = [8, 32], strides = [1, 1]} : vector<8x64xf32> to vector<8x32xf32>
    %122 = vector.extract_strided_slice %120 {offsets = [0, 32], sizes = [8, 32], strides = [1, 1]} : vector<8x64xf32> to vector<8x32xf32>
    %123 = vector.extract_strided_slice %110 {offsets = [0, 64], sizes = [8, 32], strides = [1, 1]} : vector<8x96xf32> to vector<8x32xf32>
    %124 = vector.extract_strided_slice %112 {offsets = [0, 64], sizes = [8, 32], strides = [1, 1]} : vector<8x96xf32> to vector<8x32xf32>
    %125 = arith.addf %124, %6 : vector<8x32xf32>
    %126 = arith.mulf %121, %125 : vector<8x32xf32>
    %127 = arith.addf %123, %126 : vector<8x32xf32>
    %128 = math.tanh %127 : vector<8x32xf32>
    %cst_52 = arith.constant 1.000000e+00 : f32
    %129 = vector.broadcast %cst_52 : f32 to vector<8x32xf32>
    %130 = arith.subf %129, %122 : vector<8x32xf32>
    %131 = arith.mulf %130, %128 : vector<8x32xf32>
    %132 = arith.mulf %122, %111 : vector<8x32xf32>
    %133 = arith.addf %131, %132 : vector<8x32xf32>
    %134 = vector.broadcast %106 : i32 to vector<8x32xi32>
    %135 = arith.cmpi slt, %134, %9 : vector<8x32xi32>
    %136 = arith.select %135, %133, %111 : vector<8x32xi1>, vector<8x32xf32>
    %c0_53 = arith.constant 0 : index
    %c0_54 = arith.constant 0 : index
    %137 = vector.load %arg7[%c0_53, %c0_54] : memref<8x32xf32, #tpu.memory_space<vmem>>, vector<8x32xf32>
    tpu.vector_store %arg7[%c0_53, %c0_54], %136 {strides = array<i32>} : memref<8x32xf32, #tpu.memory_space<vmem>>, vector<8x32xf32>,
    %cst_55 = arith.constant 0.000000e+00 : f32
    %138 = vector.broadcast %cst_55 : f32 to vector<8x32xf32>
    %139 = arith.select %135, %133, %138 : vector<8x32xi1>, vector<8x32xf32>
    %140 = arith.index_cast %106 : i32 to index
    %c0_56 = arith.constant 0 : index
    %c0_57 = arith.constant 0 : index
    %141 = vector.load %arg5[%140, %c0_56, %c0_57] : memref<8x8x32xf32, #tpu.memory_space<vmem>>, vector<1x8x32xf32>
    %142 = vector.shape_cast %141 : vector<1x8x32xf32> to vector<8x32xf32>
    %143 = arith.addf %142, %139 : vector<8x32xf32>
    %144 = arith.index_cast %106 : i32 to index
    %c0_58 = arith.constant 0 : index
    %c0_59 = arith.constant 0 : index
    %145 = vector.load %arg5[%144, %c0_58, %c0_59] : memref<8x8x32xf32, #tpu.memory_space<vmem>>, vector<1x8x32xf32>
    %146 = vector.shape_cast %145 : vector<1x8x32xf32> to vector<8x32xf32>
    %147 = vector.shape_cast %143 : vector<8x32xf32> to vector<1x8x32xf32>
    tpu.vector_store %arg5[%144, %c0_58, %c0_59], %147 {strides = array<i32>} : memref<8x8x32xf32, #tpu.memory_space<vmem>>, vector<1x8x32xf32>,
    %c3_i32 = arith.constant 3 : i32
    %148 = arith.muli %c3_i32, %18 : i32
    %149 = arith.addi %16, %148 : i32
    %c0_60 = arith.constant 0 : index
    %150 = arith.index_cast %149 : i32 to index
    %c0_61 = arith.constant 0 : index
    %c0_62 = arith.constant 0 : index
    %151 = vector.load %arg1[%c0_60, %150, %c0_61, %c0_62] : memref<1x8x8x96xbf16, #tpu.memory_space<vmem>>, vector<1x1x8x96xbf16>
    %152 = vector.shape_cast %151 : vector<1x1x8x96xbf16> to vector<8x96xbf16>
    %153 = arith.extf %152 : vector<8x96xbf16> to vector<8x96xf32>
    %c0_63 = arith.constant 0 : index
    %c0_64 = arith.constant 0 : index
    %154 = vector.load %arg7[%c0_63, %c0_64] : memref<8x32xf32, #tpu.memory_space<vmem>>, vector<8x32xf32>
    %cst_65 = arith.constant dense<0.000000e+00> : vector<8x96xf32>
    %155 = tpu.matmul %154, %2, %cst_65 {dimension_numbers = #tpu.dot_dimension_numbers<[1], [0], [0], [1], [0, 0, 1, 1], [], []>} : vector<8x32xf32>, vector<32x96xf32>, vector<8x96xf32> -> vector<8x96xf32>
    %156 = vector.extract_strided_slice %153 {offsets = [0, 0], sizes = [8, 64], strides = [1, 1]} : vector<8x96xf32> to vector<8x64xf32>
    %157 = vector.extract_strided_slice %155 {offsets = [0, 0], sizes = [8, 64], strides = [1, 1]} : vector<8x96xf32> to vector<8x64xf32>
    %158 = arith.addf %156, %157 : vector<8x64xf32>
    %159 = arith.negf %158 : vector<8x64xf32>
    %160 = math.exp %159 : vector<8x64xf32>
    %cst_66 = arith.constant 1.000000e+00 : f32
    %161 = vector.broadcast %cst_66 : f32 to vector<8x64xf32>
    %162 = arith.addf %161, %160 : vector<8x64xf32>
    %163 = arith.divf %161, %162 : vector<8x64xf32>
    %164 = vector.extract_strided_slice %163 {offsets = [0, 0], sizes = [8, 32], strides = [1, 1]} : vector<8x64xf32> to vector<8x32xf32>
    %165 = vector.extract_strided_slice %163 {offsets = [0, 32], sizes = [8, 32], strides = [1, 1]} : vector<8x64xf32> to vector<8x32xf32>
    %166 = vector.extract_strided_slice %153 {offsets = [0, 64], sizes = [8, 32], strides = [1, 1]} : vector<8x96xf32> to vector<8x32xf32>
    %167 = vector.extract_strided_slice %155 {offsets = [0, 64], sizes = [8, 32], strides = [1, 1]} : vector<8x96xf32> to vector<8x32xf32>
    %168 = arith.addf %167, %6 : vector<8x32xf32>
    %169 = arith.mulf %164, %168 : vector<8x32xf32>
    %170 = arith.addf %166, %169 : vector<8x32xf32>
    %171 = math.tanh %170 : vector<8x32xf32>
    %cst_67 = arith.constant 1.000000e+00 : f32
    %172 = vector.broadcast %cst_67 : f32 to vector<8x32xf32>
    %173 = arith.subf %172, %165 : vector<8x32xf32>
    %174 = arith.mulf %173, %171 : vector<8x32xf32>
    %175 = arith.mulf %165, %154 : vector<8x32xf32>
    %176 = arith.addf %174, %175 : vector<8x32xf32>
    %177 = vector.broadcast %149 : i32 to vector<8x32xi32>
    %178 = arith.cmpi slt, %177, %9 : vector<8x32xi32>
    %179 = arith.select %178, %176, %154 : vector<8x32xi1>, vector<8x32xf32>
    %c0_68 = arith.constant 0 : index
    %c0_69 = arith.constant 0 : index
    %180 = vector.load %arg7[%c0_68, %c0_69] : memref<8x32xf32, #tpu.memory_space<vmem>>, vector<8x32xf32>
    tpu.vector_store %arg7[%c0_68, %c0_69], %179 {strides = array<i32>} : memref<8x32xf32, #tpu.memory_space<vmem>>, vector<8x32xf32>,
    %cst_70 = arith.constant 0.000000e+00 : f32
    %181 = vector.broadcast %cst_70 : f32 to vector<8x32xf32>
    %182 = arith.select %178, %176, %181 : vector<8x32xi1>, vector<8x32xf32>
    %183 = arith.index_cast %149 : i32 to index
    %c0_71 = arith.constant 0 : index
    %c0_72 = arith.constant 0 : index
    %184 = vector.load %arg5[%183, %c0_71, %c0_72] : memref<8x8x32xf32, #tpu.memory_space<vmem>>, vector<1x8x32xf32>
    %185 = vector.shape_cast %184 : vector<1x8x32xf32> to vector<8x32xf32>
    %186 = arith.addf %185, %182 : vector<8x32xf32>
    %187 = arith.index_cast %149 : i32 to index
    %c0_73 = arith.constant 0 : index
    %c0_74 = arith.constant 0 : index
    %188 = vector.load %arg5[%187, %c0_73, %c0_74] : memref<8x8x32xf32, #tpu.memory_space<vmem>>, vector<1x8x32xf32>
    %189 = vector.shape_cast %188 : vector<1x8x32xf32> to vector<8x32xf32>
    %190 = vector.shape_cast %186 : vector<8x32xf32> to vector<1x8x32xf32>
    tpu.vector_store %arg5[%187, %c0_73, %c0_74], %190 {strides = array<i32>} : memref<8x8x32xf32, #tpu.memory_space<vmem>>, vector<1x8x32xf32>,
    %c4_i32 = arith.constant 4 : i32
    %191 = arith.muli %c4_i32, %18 : i32
    %192 = arith.addi %16, %191 : i32
    %c0_75 = arith.constant 0 : index
    %193 = arith.index_cast %192 : i32 to index
    %c0_76 = arith.constant 0 : index
    %c0_77 = arith.constant 0 : index
    %194 = vector.load %arg1[%c0_75, %193, %c0_76, %c0_77] : memref<1x8x8x96xbf16, #tpu.memory_space<vmem>>, vector<1x1x8x96xbf16>
    %195 = vector.shape_cast %194 : vector<1x1x8x96xbf16> to vector<8x96xbf16>
    %196 = arith.extf %195 : vector<8x96xbf16> to vector<8x96xf32>
    %c0_78 = arith.constant 0 : index
    %c0_79 = arith.constant 0 : index
    %197 = vector.load %arg7[%c0_78, %c0_79] : memref<8x32xf32, #tpu.memory_space<vmem>>, vector<8x32xf32>
    %cst_80 = arith.constant dense<0.000000e+00> : vector<8x96xf32>
    %198 = tpu.matmul %197, %2, %cst_80 {dimension_numbers = #tpu.dot_dimension_numbers<[1], [0], [0], [1], [0, 0, 1, 1], [], []>} : vector<8x32xf32>, vector<32x96xf32>, vector<8x96xf32> -> vector<8x96xf32>
    %199 = vector.extract_strided_slice %196 {offsets = [0, 0], sizes = [8, 64], strides = [1, 1]} : vector<8x96xf32> to vector<8x64xf32>
    %200 = vector.extract_strided_slice %198 {offsets = [0, 0], sizes = [8, 64], strides = [1, 1]} : vector<8x96xf32> to vector<8x64xf32>
    %201 = arith.addf %199, %200 : vector<8x64xf32>
    %202 = arith.negf %201 : vector<8x64xf32>
    %203 = math.exp %202 : vector<8x64xf32>
    %cst_81 = arith.constant 1.000000e+00 : f32
    %204 = vector.broadcast %cst_81 : f32 to vector<8x64xf32>
    %205 = arith.addf %204, %203 : vector<8x64xf32>
    %206 = arith.divf %204, %205 : vector<8x64xf32>
    %207 = vector.extract_strided_slice %206 {offsets = [0, 0], sizes = [8, 32], strides = [1, 1]} : vector<8x64xf32> to vector<8x32xf32>
    %208 = vector.extract_strided_slice %206 {offsets = [0, 32], sizes = [8, 32], strides = [1, 1]} : vector<8x64xf32> to vector<8x32xf32>
    %209 = vector.extract_strided_slice %196 {offsets = [0, 64], sizes = [8, 32], strides = [1, 1]} : vector<8x96xf32> to vector<8x32xf32>
    %210 = vector.extract_strided_slice %198 {offsets = [0, 64], sizes = [8, 32], strides = [1, 1]} : vector<8x96xf32> to vector<8x32xf32>
    %211 = arith.addf %210, %6 : vector<8x32xf32>
    %212 = arith.mulf %207, %211 : vector<8x32xf32>
    %213 = arith.addf %209, %212 : vector<8x32xf32>
    %214 = math.tanh %213 : vector<8x32xf32>
    %cst_82 = arith.constant 1.000000e+00 : f32
    %215 = vector.broadcast %cst_82 : f32 to vector<8x32xf32>
    %216 = arith.subf %215, %208 : vector<8x32xf32>
    %217 = arith.mulf %216, %214 : vector<8x32xf32>
    %218 = arith.mulf %208, %197 : vector<8x32xf32>
    %219 = arith.addf %217, %218 : vector<8x32xf32>
    %220 = vector.broadcast %192 : i32 to vector<8x32xi32>
    %221 = arith.cmpi slt, %220, %9 : vector<8x32xi32>
    %222 = arith.select %221, %219, %197 : vector<8x32xi1>, vector<8x32xf32>
    %c0_83 = arith.constant 0 : index
    %c0_84 = arith.constant 0 : index
    %223 = vector.load %arg7[%c0_83, %c0_84] : memref<8x32xf32, #tpu.memory_space<vmem>>, vector<8x32xf32>
    tpu.vector_store %arg7[%c0_83, %c0_84], %222 {strides = array<i32>} : memref<8x32xf32, #tpu.memory_space<vmem>>, vector<8x32xf32>,
    %cst_85 = arith.constant 0.000000e+00 : f32
    %224 = vector.broadcast %cst_85 : f32 to vector<8x32xf32>
    %225 = arith.select %221, %219, %224 : vector<8x32xi1>, vector<8x32xf32>
    %226 = arith.index_cast %192 : i32 to index
    %c0_86 = arith.constant 0 : index
    %c0_87 = arith.constant 0 : index
    %227 = vector.load %arg5[%226, %c0_86, %c0_87] : memref<8x8x32xf32, #tpu.memory_space<vmem>>, vector<1x8x32xf32>
    %228 = vector.shape_cast %227 : vector<1x8x32xf32> to vector<8x32xf32>
    %229 = arith.addf %228, %225 : vector<8x32xf32>
    %230 = arith.index_cast %192 : i32 to index
    %c0_88 = arith.constant 0 : index
    %c0_89 = arith.constant 0 : index
    %231 = vector.load %arg5[%230, %c0_88, %c0_89] : memref<8x8x32xf32, #tpu.memory_space<vmem>>, vector<1x8x32xf32>
    %232 = vector.shape_cast %231 : vector<1x8x32xf32> to vector<8x32xf32>
    %233 = vector.shape_cast %229 : vector<8x32xf32> to vector<1x8x32xf32>
    tpu.vector_store %arg5[%230, %c0_88, %c0_89], %233 {strides = array<i32>} : memref<8x8x32xf32, #tpu.memory_space<vmem>>, vector<1x8x32xf32>,
    %c5_i32 = arith.constant 5 : i32
    %234 = arith.muli %c5_i32, %18 : i32
    %235 = arith.addi %16, %234 : i32
    %c0_90 = arith.constant 0 : index
    %236 = arith.index_cast %235 : i32 to index
    %c0_91 = arith.constant 0 : index
    %c0_92 = arith.constant 0 : index
    %237 = vector.load %arg1[%c0_90, %236, %c0_91, %c0_92] : memref<1x8x8x96xbf16, #tpu.memory_space<vmem>>, vector<1x1x8x96xbf16>
    %238 = vector.shape_cast %237 : vector<1x1x8x96xbf16> to vector<8x96xbf16>
    %239 = arith.extf %238 : vector<8x96xbf16> to vector<8x96xf32>
    %c0_93 = arith.constant 0 : index
    %c0_94 = arith.constant 0 : index
    %240 = vector.load %arg7[%c0_93, %c0_94] : memref<8x32xf32, #tpu.memory_space<vmem>>, vector<8x32xf32>
    %cst_95 = arith.constant dense<0.000000e+00> : vector<8x96xf32>
    %241 = tpu.matmul %240, %2, %cst_95 {dimension_numbers = #tpu.dot_dimension_numbers<[1], [0], [0], [1], [0, 0, 1, 1], [], []>} : vector<8x32xf32>, vector<32x96xf32>, vector<8x96xf32> -> vector<8x96xf32>
    %242 = vector.extract_strided_slice %239 {offsets = [0, 0], sizes = [8, 64], strides = [1, 1]} : vector<8x96xf32> to vector<8x64xf32>
    %243 = vector.extract_strided_slice %241 {offsets = [0, 0], sizes = [8, 64], strides = [1, 1]} : vector<8x96xf32> to vector<8x64xf32>
    %244 = arith.addf %242, %243 : vector<8x64xf32>
    %245 = arith.negf %244 : vector<8x64xf32>
    %246 = math.exp %245 : vector<8x64xf32>
    %cst_96 = arith.constant 1.000000e+00 : f32
    %247 = vector.broadcast %cst_96 : f32 to vector<8x64xf32>
    %248 = arith.addf %247, %246 : vector<8x64xf32>
    %249 = arith.divf %247, %248 : vector<8x64xf32>
    %250 = vector.extract_strided_slice %249 {offsets = [0, 0], sizes = [8, 32], strides = [1, 1]} : vector<8x64xf32> to vector<8x32xf32>
    %251 = vector.extract_strided_slice %249 {offsets = [0, 32], sizes = [8, 32], strides = [1, 1]} : vector<8x64xf32> to vector<8x32xf32>
    %252 = vector.extract_strided_slice %239 {offsets = [0, 64], sizes = [8, 32], strides = [1, 1]} : vector<8x96xf32> to vector<8x32xf32>
    %253 = vector.extract_strided_slice %241 {offsets = [0, 64], sizes = [8, 32], strides = [1, 1]} : vector<8x96xf32> to vector<8x32xf32>
    %254 = arith.addf %253, %6 : vector<8x32xf32>
    %255 = arith.mulf %250, %254 : vector<8x32xf32>
    %256 = arith.addf %252, %255 : vector<8x32xf32>
    %257 = math.tanh %256 : vector<8x32xf32>
    %cst_97 = arith.constant 1.000000e+00 : f32
    %258 = vector.broadcast %cst_97 : f32 to vector<8x32xf32>
    %259 = arith.subf %258, %251 : vector<8x32xf32>
    %260 = arith.mulf %259, %257 : vector<8x32xf32>
    %261 = arith.mulf %251, %240 : vector<8x32xf32>
    %262 = arith.addf %260, %261 : vector<8x32xf32>
    %263 = vector.broadcast %235 : i32 to vector<8x32xi32>
    %264 = arith.cmpi slt, %263, %9 : vector<8x32xi32>
    %265 = arith.select %264, %262, %240 : vector<8x32xi1>, vector<8x32xf32>
    %c0_98 = arith.constant 0 : index
    %c0_99 = arith.constant 0 : index
    %266 = vector.load %arg7[%c0_98, %c0_99] : memref<8x32xf32, #tpu.memory_space<vmem>>, vector<8x32xf32>
    tpu.vector_store %arg7[%c0_98, %c0_99], %265 {strides = array<i32>} : memref<8x32xf32, #tpu.memory_space<vmem>>, vector<8x32xf32>,
    %cst_100 = arith.constant 0.000000e+00 : f32
    %267 = vector.broadcast %cst_100 : f32 to vector<8x32xf32>
    %268 = arith.select %264, %262, %267 : vector<8x32xi1>, vector<8x32xf32>
    %269 = arith.index_cast %235 : i32 to index
    %c0_101 = arith.constant 0 : index
    %c0_102 = arith.constant 0 : index
    %270 = vector.load %arg5[%269, %c0_101, %c0_102] : memref<8x8x32xf32, #tpu.memory_space<vmem>>, vector<1x8x32xf32>
    %271 = vector.shape_cast %270 : vector<1x8x32xf32> to vector<8x32xf32>
    %272 = arith.addf %271, %268 : vector<8x32xf32>
    %273 = arith.index_cast %235 : i32 to index
    %c0_103 = arith.constant 0 : index
    %c0_104 = arith.constant 0 : index
    %274 = vector.load %arg5[%273, %c0_103, %c0_104] : memref<8x8x32xf32, #tpu.memory_space<vmem>>, vector<1x8x32xf32>
    %275 = vector.shape_cast %274 : vector<1x8x32xf32> to vector<8x32xf32>
    %276 = vector.shape_cast %272 : vector<8x32xf32> to vector<1x8x32xf32>
    tpu.vector_store %arg5[%273, %c0_103, %c0_104], %276 {strides = array<i32>} : memref<8x8x32xf32, #tpu.memory_space<vmem>>, vector<1x8x32xf32>,
    %c6_i32 = arith.constant 6 : i32
    %277 = arith.muli %c6_i32, %18 : i32
    %278 = arith.addi %16, %277 : i32
    %c0_105 = arith.constant 0 : index
    %279 = arith.index_cast %278 : i32 to index
    %c0_106 = arith.constant 0 : index
    %c0_107 = arith.constant 0 : index
    %280 = vector.load %arg1[%c0_105, %279, %c0_106, %c0_107] : memref<1x8x8x96xbf16, #tpu.memory_space<vmem>>, vector<1x1x8x96xbf16>
    %281 = vector.shape_cast %280 : vector<1x1x8x96xbf16> to vector<8x96xbf16>
    %282 = arith.extf %281 : vector<8x96xbf16> to vector<8x96xf32>
    %c0_108 = arith.constant 0 : index
    %c0_109 = arith.constant 0 : index
    %283 = vector.load %arg7[%c0_108, %c0_109] : memref<8x32xf32, #tpu.memory_space<vmem>>, vector<8x32xf32>
    %cst_110 = arith.constant dense<0.000000e+00> : vector<8x96xf32>
    %284 = tpu.matmul %283, %2, %cst_110 {dimension_numbers = #tpu.dot_dimension_numbers<[1], [0], [0], [1], [0, 0, 1, 1], [], []>} : vector<8x32xf32>, vector<32x96xf32>, vector<8x96xf32> -> vector<8x96xf32>
    %285 = vector.extract_strided_slice %282 {offsets = [0, 0], sizes = [8, 64], strides = [1, 1]} : vector<8x96xf32> to vector<8x64xf32>
    %286 = vector.extract_strided_slice %284 {offsets = [0, 0], sizes = [8, 64], strides = [1, 1]} : vector<8x96xf32> to vector<8x64xf32>
    %287 = arith.addf %285, %286 : vector<8x64xf32>
    %288 = arith.negf %287 : vector<8x64xf32>
    %289 = math.exp %288 : vector<8x64xf32>
    %cst_111 = arith.constant 1.000000e+00 : f32
    %290 = vector.broadcast %cst_111 : f32 to vector<8x64xf32>
    %291 = arith.addf %290, %289 : vector<8x64xf32>
    %292 = arith.divf %290, %291 : vector<8x64xf32>
    %293 = vector.extract_strided_slice %292 {offsets = [0, 0], sizes = [8, 32], strides = [1, 1]} : vector<8x64xf32> to vector<8x32xf32>
    %294 = vector.extract_strided_slice %292 {offsets = [0, 32], sizes = [8, 32], strides = [1, 1]} : vector<8x64xf32> to vector<8x32xf32>
    %295 = vector.extract_strided_slice %282 {offsets = [0, 64], sizes = [8, 32], strides = [1, 1]} : vector<8x96xf32> to vector<8x32xf32>
    %296 = vector.extract_strided_slice %284 {offsets = [0, 64], sizes = [8, 32], strides = [1, 1]} : vector<8x96xf32> to vector<8x32xf32>
    %297 = arith.addf %296, %6 : vector<8x32xf32>
    %298 = arith.mulf %293, %297 : vector<8x32xf32>
    %299 = arith.addf %295, %298 : vector<8x32xf32>
    %300 = math.tanh %299 : vector<8x32xf32>
    %cst_112 = arith.constant 1.000000e+00 : f32
    %301 = vector.broadcast %cst_112 : f32 to vector<8x32xf32>
    %302 = arith.subf %301, %294 : vector<8x32xf32>
    %303 = arith.mulf %302, %300 : vector<8x32xf32>
    %304 = arith.mulf %294, %283 : vector<8x32xf32>
    %305 = arith.addf %303, %304 : vector<8x32xf32>
    %306 = vector.broadcast %278 : i32 to vector<8x32xi32>
    %307 = arith.cmpi slt, %306, %9 : vector<8x32xi32>
    %308 = arith.select %307, %305, %283 : vector<8x32xi1>, vector<8x32xf32>
    %c0_113 = arith.constant 0 : index
    %c0_114 = arith.constant 0 : index
    %309 = vector.load %arg7[%c0_113, %c0_114] : memref<8x32xf32, #tpu.memory_space<vmem>>, vector<8x32xf32>
    tpu.vector_store %arg7[%c0_113, %c0_114], %308 {strides = array<i32>} : memref<8x32xf32, #tpu.memory_space<vmem>>, vector<8x32xf32>,
    %cst_115 = arith.constant 0.000000e+00 : f32
    %310 = vector.broadcast %cst_115 : f32 to vector<8x32xf32>
    %311 = arith.select %307, %305, %310 : vector<8x32xi1>, vector<8x32xf32>
    %312 = arith.index_cast %278 : i32 to index
    %c0_116 = arith.constant 0 : index
    %c0_117 = arith.constant 0 : index
    %313 = vector.load %arg5[%312, %c0_116, %c0_117] : memref<8x8x32xf32, #tpu.memory_space<vmem>>, vector<1x8x32xf32>
    %314 = vector.shape_cast %313 : vector<1x8x32xf32> to vector<8x32xf32>
    %315 = arith.addf %314, %311 : vector<8x32xf32>
    %316 = arith.index_cast %278 : i32 to index
    %c0_118 = arith.constant 0 : index
    %c0_119 = arith.constant 0 : index
    %317 = vector.load %arg5[%316, %c0_118, %c0_119] : memref<8x8x32xf32, #tpu.memory_space<vmem>>, vector<1x8x32xf32>
    %318 = vector.shape_cast %317 : vector<1x8x32xf32> to vector<8x32xf32>
    %319 = vector.shape_cast %315 : vector<8x32xf32> to vector<1x8x32xf32>
    tpu.vector_store %arg5[%316, %c0_118, %c0_119], %319 {strides = array<i32>} : memref<8x8x32xf32, #tpu.memory_space<vmem>>, vector<1x8x32xf32>,
    %c7_i32_120 = arith.constant 7 : i32
    %320 = arith.muli %c7_i32_120, %18 : i32
    %321 = arith.addi %16, %320 : i32
    %c0_121 = arith.constant 0 : index
    %322 = arith.index_cast %321 : i32 to index
    %c0_122 = arith.constant 0 : index
    %c0_123 = arith.constant 0 : index
    %323 = vector.load %arg1[%c0_121, %322, %c0_122, %c0_123] : memref<1x8x8x96xbf16, #tpu.memory_space<vmem>>, vector<1x1x8x96xbf16>
    %324 = vector.shape_cast %323 : vector<1x1x8x96xbf16> to vector<8x96xbf16>
    %325 = arith.extf %324 : vector<8x96xbf16> to vector<8x96xf32>
    %c0_124 = arith.constant 0 : index
    %c0_125 = arith.constant 0 : index
    %326 = vector.load %arg7[%c0_124, %c0_125] : memref<8x32xf32, #tpu.memory_space<vmem>>, vector<8x32xf32>
    %cst_126 = arith.constant dense<0.000000e+00> : vector<8x96xf32>
    %327 = tpu.matmul %326, %2, %cst_126 {dimension_numbers = #tpu.dot_dimension_numbers<[1], [0], [0], [1], [0, 0, 1, 1], [], []>} : vector<8x32xf32>, vector<32x96xf32>, vector<8x96xf32> -> vector<8x96xf32>
    %328 = vector.extract_strided_slice %325 {offsets = [0, 0], sizes = [8, 64], strides = [1, 1]} : vector<8x96xf32> to vector<8x64xf32>
    %329 = vector.extract_strided_slice %327 {offsets = [0, 0], sizes = [8, 64], strides = [1, 1]} : vector<8x96xf32> to vector<8x64xf32>
    %330 = arith.addf %328, %329 : vector<8x64xf32>
    %331 = arith.negf %330 : vector<8x64xf32>
    %332 = math.exp %331 : vector<8x64xf32>
    %cst_127 = arith.constant 1.000000e+00 : f32
    %333 = vector.broadcast %cst_127 : f32 to vector<8x64xf32>
    %334 = arith.addf %333, %332 : vector<8x64xf32>
    %335 = arith.divf %333, %334 : vector<8x64xf32>
    %336 = vector.extract_strided_slice %335 {offsets = [0, 0], sizes = [8, 32], strides = [1, 1]} : vector<8x64xf32> to vector<8x32xf32>
    %337 = vector.extract_strided_slice %335 {offsets = [0, 32], sizes = [8, 32], strides = [1, 1]} : vector<8x64xf32> to vector<8x32xf32>
    %338 = vector.extract_strided_slice %325 {offsets = [0, 64], sizes = [8, 32], strides = [1, 1]} : vector<8x96xf32> to vector<8x32xf32>
    %339 = vector.extract_strided_slice %327 {offsets = [0, 64], sizes = [8, 32], strides = [1, 1]} : vector<8x96xf32> to vector<8x32xf32>
    %340 = arith.addf %339, %6 : vector<8x32xf32>
    %341 = arith.mulf %336, %340 : vector<8x32xf32>
    %342 = arith.addf %338, %341 : vector<8x32xf32>
    %343 = math.tanh %342 : vector<8x32xf32>
    %cst_128 = arith.constant 1.000000e+00 : f32
    %344 = vector.broadcast %cst_128 : f32 to vector<8x32xf32>
    %345 = arith.subf %344, %337 : vector<8x32xf32>
    %346 = arith.mulf %345, %343 : vector<8x32xf32>
    %347 = arith.mulf %337, %326 : vector<8x32xf32>
    %348 = arith.addf %346, %347 : vector<8x32xf32>
    %349 = vector.broadcast %321 : i32 to vector<8x32xi32>
    %350 = arith.cmpi slt, %349, %9 : vector<8x32xi32>
    %351 = arith.select %350, %348, %326 : vector<8x32xi1>, vector<8x32xf32>
    %c0_129 = arith.constant 0 : index
    %c0_130 = arith.constant 0 : index
    %352 = vector.load %arg7[%c0_129, %c0_130] : memref<8x32xf32, #tpu.memory_space<vmem>>, vector<8x32xf32>
    tpu.vector_store %arg7[%c0_129, %c0_130], %351 {strides = array<i32>} : memref<8x32xf32, #tpu.memory_space<vmem>>, vector<8x32xf32>,
    %cst_131 = arith.constant 0.000000e+00 : f32
    %353 = vector.broadcast %cst_131 : f32 to vector<8x32xf32>
    %354 = arith.select %350, %348, %353 : vector<8x32xi1>, vector<8x32xf32>
    %355 = arith.index_cast %321 : i32 to index
    %c0_132 = arith.constant 0 : index
    %c0_133 = arith.constant 0 : index
    %356 = vector.load %arg5[%355, %c0_132, %c0_133] : memref<8x8x32xf32, #tpu.memory_space<vmem>>, vector<1x8x32xf32>
    %357 = vector.shape_cast %356 : vector<1x8x32xf32> to vector<8x32xf32>
    %358 = arith.addf %357, %354 : vector<8x32xf32>
    %359 = arith.index_cast %321 : i32 to index
    %c0_134 = arith.constant 0 : index
    %c0_135 = arith.constant 0 : index
    %360 = vector.load %arg5[%359, %c0_134, %c0_135] : memref<8x8x32xf32, #tpu.memory_space<vmem>>, vector<1x8x32xf32>
    %361 = vector.shape_cast %360 : vector<1x8x32xf32> to vector<8x32xf32>
    %362 = vector.shape_cast %358 : vector<8x32xf32> to vector<1x8x32xf32>
    tpu.vector_store %arg5[%359, %c0_134, %c0_135], %362 {strides = array<i32>} : memref<8x8x32xf32, #tpu.memory_space<vmem>>, vector<1x8x32xf32>,
    %c8_i32 = arith.constant 8 : i32
    %c0_136 = arith.constant 0 : index
    %c0_137 = arith.constant 0 : index
    %363 = vector.load %arg7[%c0_136, %c0_137] : memref<8x32xf32, #tpu.memory_space<vmem>>, vector<8x32xf32>
    %c0_138 = arith.constant 0 : index
    %c0_139 = arith.constant 0 : index
    %c0_140 = arith.constant 0 : index
    %364 = vector.load %arg6[%c0_138, %c0_139, %c0_140] : memref<1x8x32xf32, #tpu.memory_space<vmem>>, vector<1x8x32xf32>
    %365 = vector.shape_cast %364 : vector<1x8x32xf32> to vector<8x32xf32>
    %366 = vector.shape_cast %363 : vector<8x32xf32> to vector<1x8x32xf32>
    tpu.vector_store %arg6[%c0_138, %c0_139, %c0_140], %366 {strides = array<i32>} : memref<1x8x32xf32, #tpu.memory_space<vmem>>, vector<1x8x32xf32>,
    return
  }
  func.func @transform_0(%arg0: i32) -> (i32, i32, i32, i32) {
    %c0_i32 = arith.constant 0 : i32
    %c0_i32_0 = arith.constant 0 : i32
    %c0_i32_1 = arith.constant 0 : i32
    %c0_i32_2 = arith.constant 0 : i32
    return %arg0, %c0_i32, %c0_i32_0, %c0_i32_1 : i32, i32, i32, i32
  }
  func.func @transform_1(%arg0: i32) -> (i32, i32) {
    %c0_i32 = arith.constant 0 : i32
    %c0_i32_0 = arith.constant 0 : i32
    %c0_i32_1 = arith.constant 0 : i32
    return %c0_i32, %c0_i32_0 : i32, i32
  }
  func.func @transform_2(%arg0: i32) -> (i32, i32, i32) {
    %c0_i32 = arith.constant 0 : i32
    %c0_i32_0 = arith.constant 0 : i32
    %c0_i32_1 = arith.constant 0 : i32
    return %arg0, %c0_i32, %c0_i32_0 : i32, i32, i32
  }
  func.func @transform_3(%arg0: i32) -> (i32, i32, i32) {
    %c0_i32 = arith.constant 0 : i32
    %c0_i32_0 = arith.constant 0 : i32
    %c0_i32_1 = arith.constant 0 : i32
    return %arg0, %c0_i32, %c0_i32_0 : i32, i32, i32
  }
  func.func @transform_4(%arg0: i32) -> (i32, i32, i32) {
    %c0_i32 = arith.constant 0 : i32
    %c0_i32_0 = arith.constant 0 : i32
    %c0_i32_1 = arith.constant 0 : i32
    %c0_i32_2 = arith.constant 0 : i32
    return %c0_i32, %c0_i32_0, %c0_i32_1 : i32, i32, i32
  }
  func.func @transform_5(%arg0: i32) -> (i32, i32, i32) {
    %c0_i32 = arith.constant 0 : i32
    %c0_i32_0 = arith.constant 0 : i32
    %c0_i32_1 = arith.constant 0 : i32
    return %arg0, %c0_i32, %c0_i32_0 : i32, i32, i32
  }
}

</mosaic_0001>

<bundles_post_ra>
// kernel: encoder_forward.1
= control target key start
LH: loop header
LB: loop body
LE: loop exit
PB: predicated region body
PF: predicated region fallthrough
CT: control target
= control target key end

     0   :  { %s1749_s18 = smov 0   ;;  %s2198_s0 = inlined_call_operand.vmem [shape: bf16[2,8,8,96], index: 0, kind: input, shape index: {}]   ;;  %s2199_s1 = inlined_call_operand.vmem [shape: s32[8,1], index: 1, kind: input, shape index: {}]   ;;  %s2200_s2 = inlined_call_operand.vmem [shape: bf16[2,32,96], index: 2, kind: input, shape index: {}]   ;;  %s2201_s3 = inlined_call_operand.vmem [shape: f32[2,1,32], index: 3, kind: input, shape index: {}]   ;;  %s2202_s4 = inlined_call_operand.vmem [shape: f32[8,8,32], index: 4, kind: output, shape index: {0}]   ;;  %s2203_s5 = inlined_call_operand.vmem [shape: f32[2,8,32], index: 5, kind: output, shape index: {1}]  }
   0x1 LB: > { %s1755_s19 = sadd.s32 4294967295, %s1710_s18   ;;  %p1457_p0 = scmp.ge.s32.totalorder %s1710_s18, 1  ;;  %s1710_s18 = sphi %s1749_s18, %s16_s18  }
   0x2   : > { %p203_p1 = scmp.lt.s32.totalorder %s1710_s18, 3 }
   0x4   : > { %p204_p2 = pnand %p1457_p0, %p203_p1 }
   0x5   : > { %p238_p3 = scmp.lt.s32.totalorder (!%p204_p2), %s1755_s19, 1  ;;  %p275_p4 = scmp.eq.s32.totalorder (!%p204_p2), %s1755_s19, 0 }
   0x6   : > { %207 = sbr.rel (%p204_p2) target bundleno = 5647 (0x160f), region = 36  ;;  %p1464_p5 = scmp.ne.s32.totalorder (!%p204_p2), %s1755_s19, 0 }
   0xb   : > { %v269_v0 = vld [vmem:[%s2199_s1] sm:$0xff]  ;;  %vm273_vm0 = vcmask 261120   ;;  %v1712_v1 = vmov 0   ;;  %v1713_v2 = vmov 0.0   ;;  %s239_s22 = scalar_select %p238_p3, %s1755_s19, 1 }
   0xc   : > { %1655 = vset.pattern.permute.xlu0 %v1712_v1  ;;  %274 = vst.msk [vmem:[#allocation2] sm:$0xff] %vm273_vm0, %v1713_v2 }
   0xd   : > { %271 = vperm.xlu0 %1655, %v269_v0   ;;  %s1501_s23 = sshll.u32 %s239_s22, 5  ;;  %s1502_s24 = sshll.u32 %s239_s22, 4 }
   0xe   : > { %s1770_s27 = scalar_lea.vmem %s2198_s0, %s1501_s23  ;;  %s247_s30 = scalar_lea.vmem %s2200_s2, %s1502_s24 }
   0xf   : > { %s250_s8 = scalar_lea.vmem %s2201_s3, %s239_s22  ;;  %s1462_s9 = sshll.u32 %s239_s22, 3  ;;  %v1504_v3 = vld [vmem:[%s247_s30] sm:$0xff]   ;;  %v1511_v4 = vld [vmem:[%s247_s30 + $0x8] sm:$0xff]  }
  0x10   : > { %s1781_s12 = scalar_lea.vmem %s2203_s5, %s1462_s9  ;;  %v1783_v5 = vunpack.c.l.bf16 %v1504_v3  ;;  %v1785_v6 = vunpack.c.h.bf16 %v1504_v3  ;;  %v1787_v7 = vunpack.c.l.bf16 %v1511_v4  ;;  %v1789_v8 = vunpack.c.h.bf16 %v1511_v4  ;;  %v1463_v9 = vld [vmem:[%s250_s8] ss:$0 sm:$0xff] }
  0x84   : > { %278 = sbr.rel (%p1464_p5) target bundleno = 142 (0x8e), region = 40 }
  0x88   : > { %v1791_v10 = vpop.permute.xlu0 %271 }
  0x89   : > { %v1714_v11 = vmov 0.0  }
  0x8a   : > { %279 = vst.msk [vmem:[%s2202_s4] sm:$0xff] %vm273_vm0, %v1714_v11  ;;  %280 = vst.msk [vmem:[%s2202_s4 + $0x8] sm:$0xff] %vm273_vm0, %v1714_v11 }
  0x8b   : > { %281 = vst.msk [vmem:[%s2202_s4 + $0x10] sm:$0xff] %vm273_vm0, %v1714_v11  ;;  %282 = vst.msk [vmem:[%s2202_s4 + $0x18] sm:$0xff] %vm273_vm0, %v1714_v11 }
  0x8c   : > { %283 = vst.msk [vmem:[%s2202_s4 + $0x20] sm:$0xff] %vm273_vm0, %v1714_v11  ;;  %284 = vst.msk [vmem:[%s2202_s4 + $0x28] sm:$0xff] %vm273_vm0, %v1714_v11 }
  0x8d   : > { %285 = vst.msk [vmem:[%s2202_s4 + $0x30] sm:$0xff] %vm273_vm0, %v1714_v11  ;;  %286 = vst.msk [vmem:[%s2202_s4 + $0x38] sm:$0xff] %vm273_vm0, %v1714_v11 }
  0x8e PF: > { %1552 = vmatprep.subr.mxu0 %v1713_v2  ;;  %1563 = vmatprep.subr.mxu1 %v1713_v2  ;;  %vm1715_vm1 = vmmov 0   ;;  %s1716_s7 = smov 64   ;;  %v293_v12 = vld [vmem:[#allocation2] sm:$0xff]  ;;  %s1717_s8 = smov 32  }
  0x8f   : > { %1553 = vmatpush3.msra.mxu0 %v1789_v8  ;;  %1560 = vmatprep.mubr.msk.f32.mxu0 %vm1715_vm1, %v1713_v2  ;;  %s1867_s9 = scalar_select %p275_p4, 0, 7 }
  0x90   : > { %1554 = vmatprep.subr.mxu0 %v1713_v2  ;;  %374 = vrot.lane.b32.xlu0 %v1463_v9, %s1716_s7  ;;  %s1718_s13 = smov 96  }
  0x91   : > { %1555 = vmatpush3.msra.mxu0 %v1787_v7  ;;  %1564 = vmatpush3.msra.mxu1 %v1789_v8  ;;  %s1465_s10 = sshll.u32 %s1867_s9, 2  ;;  %v400_v31 = vstv %s1867_s9 }
  0x92   : > { %1556 = vmatprep.subr.mxu0 %v1713_v2  ;;  %1565 = vmatprep.subr.mxu1 %v1713_v2  ;;  %s290_s11 = scalar_lea.vmem %s1770_s27, %s1465_s10  ;;  %vm1875_vm2 = vcmp.lt.s32.totalorder %v400_v31, %v1791_v10 }
  0x93   : > { %1557 = vmatpush3.msra.mxu0 %v1785_v6  ;;  %1566 = vmatpush3.msra.mxu1 %v1787_v7  ;;  %v291_v17 = vld [vmem:[%s290_s11] sm:$0xf]  ;;  %s1904_s14 = scalar_select %p275_p4, 1, 4294967295 }
  0x94   : > { %1558 = vmatprep.subr.mxu0 %v1713_v2  ;;  %1567 = vmatprep.subr.mxu1 %v1713_v2  ;;  %v292_v18 = vunpack.c.l.bf16 %v291_v17 }
  0x95   : > { %1559 = vmatpush3.msra.mxu0 %v1783_v5  ;;  %1568 = vmatpush3.msra.mxu1 %v1785_v6  ;;  %s1908_s15 = sadd.s32 %s1904_s14, %s1867_s9  ;;  %s1473_s19 = sshll.u32 %s1904_s14, 1 }
  0x96   : > { %1561 = vmatmul.mubr.msk.f32.vlgmr.msra.gmra.mxu0 %vm273_vm0, %v293_v12  ;;  %1569 = vmatprep.subr.mxu1 %v1713_v2  ;;  %s1469_s16 = sshll.u32 %s1908_s15, 2  ;;  %v527_v58 = vstv %s1908_s15  ;;  %s1946_s20 = sadd.s32 %s1473_s19, %s1867_s9 }
  0x97   : > { %1570 = vmatpush3.msra.mxu1 %v1783_v5  ;;  %1571 = vmatprep.mubr.msk.f32.mxu1 %vm1715_vm1, %v1713_v2  ;;  %s420_s17 = scalar_lea.vmem %s1770_s27, %s1469_s16  ;;  %vm1917_vm3 = vcmp.lt.s32.totalorder %v527_v58, %v1791_v10  ;;  %s1474_s21 = sshll.u32 %s1946_s20, 2 }
  0x98   : > { %1574 = vmatprep.subr.mxu0 %v1713_v2  ;;  %1582 = vmatprep.mubr.msk.f32.mxu0 %vm1715_vm1, %v1713_v2  ;;  %v421_v44 = vld [vmem:[%s420_s17] sm:$0xf]  ;;  %s548_s22 = scalar_lea.vmem %s1770_s27, %s1474_s21  ;;  %s673_s23 = smul.u32 3, %s1904_s14 }
  0x99   : > { %1575 = vmatpush3.msra.mxu0 %v1789_v8  ;;  %1585 = vmatprep.subr.mxu1 %v1713_v2  ;;  %v422_v45 = vunpack.c.l.bf16 %v421_v44  ;;  %s1482_s28 = sshll.u32 %s1904_s14, 2  ;;  %s929_s10 = smul.u32 5, %s1904_s14 }
  0x9a   : > { %1576 = vmatprep.subr.mxu0 %v1713_v2  ;;  %s1984_s24 = sadd.s32 %s673_s23, %s1867_s9  ;;  %s2021_s29 = sadd.s32 %s1482_s28, %s1867_s9 }
  0x9b   : > { %1577 = vmatpush3.msra.mxu0 %v1787_v7  ;;  %s1478_s25 = sshll.u32 %s1984_s24, 2  ;;  %v783_v58 = vstv %s1984_s24  ;;  %s1483_s30 = sshll.u32 %s2021_s29, 2 }
  0x9c   : > { %1578 = vmatprep.subr.mxu0 %v1713_v2  ;;  %s676_s26 = scalar_lea.vmem %s1770_s27, %s1478_s25  ;;  %vm1993_vm5 = vcmp.lt.s32.totalorder %v783_v58, %v1791_v10  ;;  %s804_s6 = scalar_lea.vmem %s1770_s27, %s1483_s30 }
  0x9d   : > { %1579 = vmatpush3.msra.mxu0 %v1785_v6  ;;  %v677_v44 = vld [vmem:[%s676_s26] sm:$0xf]  ;;  %s2058_s11 = sadd.s32 %s929_s10, %s1867_s9  ;;  %s1057_s19 = smul.u32 6, %s1904_s14 }
  0x9e   : > { %1580 = vmatprep.subr.mxu0 %v1713_v2  ;;  %s1487_s16 = sshll.u32 %s2058_s11, 2  ;;  %s1185_s25 = smul.u32 7, %s1904_s14 }
  0x9f   : > { %1581 = vmatpush3.msra.mxu0 %v1783_v5  ;;  %s932_s17 = scalar_lea.vmem %s1770_s27, %s1487_s16  ;;  %s2086_s21 = sadd.s32 %s1057_s19, %s1867_s9 }
  0xa0   : > { %1596 = vmatprep.subr.mxu0 %v1713_v2  ;;  %s2110_s26 = sadd.s32 %s1185_s25, %s1867_s9  ;;  %s1486_s19 = sshll.u32 %s2021_s29, 3 }
  0xa1   : > { %s1495_s28 = sshll.u32 %s2110_s26, 2  ;;  %v1295_v35 = vstv %s2110_s26 }
  0xa2   : > { %s1188_s30 = scalar_lea.vmem %s1770_s27, %s1495_s28  ;;  %vm1296_vm9 = vcmp.lt.s32.totalorder %v1295_v35, %v1791_v10 }
 0x102   : > { %v1860_v13 = vpop.permute.xlu0 %374 }
 0x156   : > { %v363_v14 = vpop.f32.mrf.mxu0 }
 0x157   : > { %v377_v15 = vadd.f32 %v1860_v13, %v363_v14  ;;  %v367_v19 = vadd.f32 %v363_v14, %v292_v18  ;;  %v549_v14 = vld [vmem:[%s548_s22] sm:$0xf]  ;;  %s1491_s22 = sshll.u32 %s2086_s21, 2 }
 0x158   : > { %v1562_v16 = vpop.f32.mrf.mxu0  ;;  %s1060_s23 = scalar_lea.vmem %s1770_s27, %s1491_s22  ;;  %s1472_s27 = sshll.u32 %s1908_s15, 3 }
 0x159   : > { %379 = vrot.lane.b32.xlu0 %v377_v15, %s1716_s7  ;;  %v1467_v20 = vmul.f32 -1.442695, %v367_v19  ;;  %v550_v15 = vunpack.c.l.bf16 %v549_v14  ;;  %s537_s14 = scalar_lea.vmem %s2202_s4, %s1472_s27  ;;  %s1494_s15 = sshll.u32 %s2086_s21, 3 }
 0x15b   : > { %1656 = vpow2.f32 %v1467_v20 }
 0x15d   : > { %395 = vrot.lane.b32.xlu0 %v293_v12, %s1717_s8 }
 0x168   : > { %v1657_v21 = vpop.eup %1656 }
 0x169   : > { %v371_v22 = vadd.f32 1.0, %v1657_v21 }
 0x16b   : > { %1658 = vrcp.f32 %v371_v22 }
 0x178   : > { %v1659_v23 = vpop.eup %1658 }
 0x179   : > { %v389_v30 = vsub.f32 1.0, %v1659_v23 }
 0x1cb   : > { %v380_v24 = vpop.permute.xlu0 %379 }
 0x1cc   : > { %v382_v25 = vmul.f32 %v1659_v23, %v380_v24 }
 0x1ce   : > { %384 = vrot.lane.b32.xlu1 %v382_v25, %s1716_s7 }
 0x1cf   : > { %v396_v29 = vpop.permute.xlu0 %395 }
 0x1d0   : > { %v398_v33 = vmul.f32 %v1659_v23, %v396_v29 }
 0x240   : > { %v385_v26 = vpop.permute.xlu1 %384 }
 0x241   : > { %v387_v27 = vadd.f32 %v385_v26, %v292_v18 }
 0x243   : > { %1660 = vtanh.f32 %v387_v27 }
 0x250   : > { %v1661_v28 = vpop.eup %1660 }
 0x251   : > { %391 = vrot.lane.b32.xlu1 %v1661_v28, %s1718_s13  ;;  %v655_v28 = vstv %s1946_s20 }
 0x252   : > { %vm1955_vm4 = vcmp.lt.s32.totalorder %v655_v28, %v1791_v10 }
 0x2c3   : > { %v392_v32 = vpop.permute.xlu1 %391 }
 0x2c4   : > { %v394_v34 = vmul.f32 %v392_v32, %v389_v30 }
 0x2c6   : > { %v1879_v36 = vadd.f32 %v398_v33, %v394_v34 }
 0x2c8   : > { %v402_v37 = vsel %vm1875_vm2, %v1879_v36, %v396_v29  ;;  %v408_v38 = vsel %vm1875_vm2, %v1879_v36, 0.0 }
 0x2c9   : > { %404 = vrot.lane.b32.xlu1 %v402_v37, %s1718_s13 }
 0x33b   : > { %v405_v39 = vpop.permute.xlu1 %404 }
 0x33c   : > { %407 = vst.msk [vmem:[#allocation2] sm:$0xff] %vm273_vm0, %v405_v39 }
 0x343   : > { %v423_v40 = vld [vmem:[#allocation2] sm:$0xff] }
 0x344   : > { %1572 = vmatmul.mubr.msk.f32.vlgmr.msra.gmra.mxu1 %vm273_vm0, %v423_v40 }
 0x345   : > { %1586 = vmatpush3.msra.mxu1 %v1789_v8  ;;  %1593 = vmatprep.mubr.msk.f32.mxu1 %vm1715_vm1, %v1713_v2 }
 0x346   : > { %1587 = vmatprep.subr.mxu1 %v1713_v2 }
 0x347   : > { %1588 = vmatpush3.msra.mxu1 %v1787_v7 }
 0x348   : > { %1589 = vmatprep.subr.mxu1 %v1713_v2 }
 0x349   : > { %1590 = vmatpush3.msra.mxu1 %v1785_v6 }
 0x34a   : > { %1591 = vmatprep.subr.mxu1 %v1713_v2 }
 0x34b   : > { %1592 = vmatpush3.msra.mxu1 %v1783_v5 }
 0x34c   : > { %1607 = vmatprep.subr.mxu1 %v1713_v2 }
 0x404   : > { %v493_v41 = vpop.f32.mrf.mxu1 }
 0x405   : > { %v504_v42 = vadd.f32 %v493_v41, %v1860_v13  ;;  %v497_v46 = vadd.f32 %v493_v41, %v422_v45 }
 0x406   : > { %v1573_v43 = vpop.f32.mrf.mxu1 }
 0x407   : > { %506 = vrot.lane.b32.xlu0 %v504_v42, %s1716_s7  ;;  %v1471_v47 = vmul.f32 -1.442695, %v497_v46 }
 0x409   : > { %1662 = vpow2.f32 %v1471_v47 }
 0x416   : > { %v1663_v48 = vpop.eup %1662 }
 0x417   : > { %v501_v49 = vadd.f32 1.0, %v1663_v48 }
 0x419   : > { %1664 = vrcp.f32 %v501_v49 }
 0x426   : > { %v1665_v50 = vpop.eup %1664 }
 0x427   : > { %v516_v57 = vsub.f32 1.0, %v1665_v50 }
 0x479   : > { %v507_v51 = vpop.permute.xlu0 %506 }
 0x47a   : > { %v509_v52 = vmul.f32 %v1665_v50, %v507_v51 }
 0x47c   : > { %511 = vrot.lane.b32.xlu1 %v509_v52, %s1716_s7 }
 0x480   : > { %522 = vrot.lane.b32.xlu1 %v423_v40, %s1717_s8 }
 0x4ee   : > { %v512_v53 = vpop.permute.xlu1 %511 }
 0x4ef   : > { %v514_v54 = vadd.f32 %v512_v53, %v422_v45  ;;  %v678_v45 = vunpack.c.l.bf16 %v677_v44 }
 0x4f1   : > { %1666 = vtanh.f32 %v514_v54 }
 0x4f2   : > { %v523_v56 = vpop.permute.xlu1 %522 }
 0x4f3   : > { %v525_v60 = vmul.f32 %v1665_v50, %v523_v56 }
 0x4fe   : > { %v1667_v55 = vpop.eup %1666 }
 0x4ff   : > { %518 = vrot.lane.b32.xlu0 %v1667_v55, %s1718_s13 }
 0x571   : > { %v519_v59 = vpop.permute.xlu0 %518 }
 0x572   : > { %v521_v61 = vmul.f32 %v519_v59, %v516_v57 }
 0x574   : > { %v1921_v63 = vadd.f32 %v525_v60, %v521_v61 }
 0x576   : > { %v529_v0 = vsel %vm1917_vm3, %v1921_v63, %v523_v56  ;;  %v535_v1 = vsel %vm1917_vm3, %v1921_v63, 0.0 }
 0x577   : > { %531 = vrot.lane.b32.xlu0 %v529_v0, %s1718_s13 }
 0x5e9   : > { %v532_v3 = vpop.permute.xlu0 %531 }
 0x5ea   : > { %534 = vst.msk [vmem:[#allocation2] sm:$0xff] %vm273_vm0, %v532_v3 }
 0x5f1   : > { %v551_v4 = vld [vmem:[#allocation2] sm:$0xff] }
 0x5f2   : > { %1583 = vmatmul.mubr.msk.f32.vlgmr.msra.gmra.mxu0 %vm273_vm0, %v551_v4 }
 0x5f3   : > { %1597 = vmatpush3.msra.mxu0 %v1789_v8  ;;  %1604 = vmatprep.mubr.msk.f32.mxu0 %vm1715_vm1, %v1713_v2 }
 0x5f4   : > { %1598 = vmatprep.subr.mxu0 %v1713_v2 }
 0x5f5   : > { %1599 = vmatpush3.msra.mxu0 %v1787_v7 }
 0x5f6   : > { %1600 = vmatprep.subr.mxu0 %v1713_v2 }
 0x5f7   : > { %1601 = vmatpush3.msra.mxu0 %v1785_v6 }
 0x5f8   : > { %1602 = vmatprep.subr.mxu0 %v1713_v2 }
 0x5f9   : > { %1603 = vmatpush3.msra.mxu0 %v1783_v5 }
 0x5fa   : > { %1618 = vmatprep.subr.mxu0 %v1713_v2 }
 0x6b2   : > { %v621_v9 = vpop.f32.mrf.mxu0 }
 0x6b3   : > { %v632_v11 = vadd.f32 %v621_v9, %v1860_v13  ;;  %v625_v16 = vadd.f32 %v621_v9, %v550_v15 }
 0x6b4   : > { %v1584_v12 = vpop.f32.mrf.mxu0 }
 0x6b5   : > { %634 = vrot.lane.b32.xlu1 %v632_v11, %s1716_s7  ;;  %v1476_v17 = vmul.f32 -1.442695, %v625_v16 }
 0x6b7   : > { %1668 = vpow2.f32 %v1476_v17  ;;  %v805_v17 = vld [vmem:[%s804_s6] sm:$0xf]  ;;  %s1481_s6 = sshll.u32 %s1984_s24, 3 }
 0x6c4   : > { %v1669_v18 = vpop.eup %1668 }
 0x6c5   : > { %v629_v19 = vadd.f32 1.0, %v1669_v18  ;;  %v806_v18 = vunpack.c.l.bf16 %v805_v17 }
 0x6c7   : > { %1670 = vrcp.f32 %v629_v19 }
 0x6d4   : > { %v1671_v20 = vpop.eup %1670 }
 0x6d5   : > { %v644_v27 = vsub.f32 1.0, %v1671_v20 }
 0x727   : > { %v635_v21 = vpop.permute.xlu1 %634 }
 0x728   : > { %v637_v22 = vmul.f32 %v1671_v20, %v635_v21 }
 0x72a   : > { %639 = vrot.lane.b32.xlu0 %v637_v22, %s1716_s7 }
 0x72e   : > { %650 = vrot.lane.b32.xlu0 %v551_v4, %s1717_s8 }
 0x79c   : > { %v640_v23 = vpop.permute.xlu0 %639 }
 0x79d   : > { %v642_v24 = vadd.f32 %v640_v23, %v550_v15 }
 0x79f   : > { %1672 = vtanh.f32 %v642_v24 }
 0x7a0   : > { %v651_v26 = vpop.permute.xlu0 %650 }
 0x7a1   : > { %v653_v30 = vmul.f32 %v1671_v20, %v651_v26 }
 0x7ac   : > { %v1673_v25 = vpop.eup %1672 }
 0x7ad   : > { %646 = vrot.lane.b32.xlu1 %v1673_v25, %s1718_s13 }
 0x81f   : > { %v647_v29 = vpop.permute.xlu1 %646 }
 0x820   : > { %v649_v31 = vmul.f32 %v647_v29, %v644_v27 }
 0x822   : > { %v1959_v33 = vadd.f32 %v653_v30, %v649_v31  ;;  %v911_v31 = vstv %s2021_s29  ;;  %s1468_s29 = sshll.u32 %s1867_s9, 3  ;;  %s1490_s9 = sshll.u32 %s2058_s11, 3 }
 0x823   : > { %vm2030_vm6 = vcmp.lt.s32.totalorder %v911_v31, %v1791_v10 }
 0x824   : > { %v657_v34 = vsel %vm1955_vm4, %v1959_v33, %v651_v26  ;;  %v663_v37 = vsel %vm1955_vm4, %v1959_v33, 0.0 }
 0x825   : > { %659 = vrot.lane.b32.xlu1 %v657_v34, %s1718_s13 }
 0x897   : > { %v660_v39 = vpop.permute.xlu1 %659 }
 0x898   : > { %662 = vst.msk [vmem:[#allocation2] sm:$0xff] %vm273_vm0, %v660_v39 }
 0x89f   : > { %v679_v40 = vld [vmem:[#allocation2] sm:$0xff] }
 0x8a0   : > { %1594 = vmatmul.mubr.msk.f32.vlgmr.msra.gmra.mxu1 %vm273_vm0, %v679_v40 }
 0x8a1   : > { %1608 = vmatpush3.msra.mxu1 %v1789_v8  ;;  %1615 = vmatprep.mubr.msk.f32.mxu1 %vm1715_vm1, %v1713_v2 }
 0x8a2   : > { %1609 = vmatprep.subr.mxu1 %v1713_v2 }
 0x8a3   : > { %1610 = vmatpush3.msra.mxu1 %v1787_v7 }
 0x8a4   : > { %1611 = vmatprep.subr.mxu1 %v1713_v2 }
 0x8a5   : > { %1612 = vmatpush3.msra.mxu1 %v1785_v6 }
 0x8a6   : > { %1613 = vmatprep.subr.mxu1 %v1713_v2 }
 0x8a7   : > { %1614 = vmatpush3.msra.mxu1 %v1783_v5 }
 0x8a8   : > { %1629 = vmatprep.subr.mxu1 %v1713_v2 }
 0x960   : > { %v749_v41 = vpop.f32.mrf.mxu1 }
 0x961   : > { %v760_v42 = vadd.f32 %v749_v41, %v1860_v13  ;;  %v753_v46 = vadd.f32 %v749_v41, %v678_v45 }
 0x962   : > { %v1595_v43 = vpop.f32.mrf.mxu1 }
 0x963   : > { %762 = vrot.lane.b32.xlu0 %v760_v42, %s1716_s7  ;;  %v1480_v47 = vmul.f32 -1.442695, %v753_v46 }
 0x965   : > { %1674 = vpow2.f32 %v1480_v47 }
 0x972   : > { %v1675_v48 = vpop.eup %1674 }
 0x973   : > { %v757_v49 = vadd.f32 1.0, %v1675_v48 }
 0x975   : > { %1676 = vrcp.f32 %v757_v49 }
 0x982   : > { %v1677_v50 = vpop.eup %1676 }
 0x983   : > { %v772_v57 = vsub.f32 1.0, %v1677_v50 }
 0x9d5   : > { %v763_v51 = vpop.permute.xlu0 %762 }
 0x9d6   : > { %v765_v52 = vmul.f32 %v1677_v50, %v763_v51 }
 0x9d8   : > { %767 = vrot.lane.b32.xlu1 %v765_v52, %s1716_s7 }
 0x9dc   : > { %778 = vrot.lane.b32.xlu1 %v679_v40, %s1717_s8 }
 0xa4a   : > { %v768_v53 = vpop.permute.xlu1 %767 }
 0xa4b   : > { %v770_v54 = vadd.f32 %v768_v53, %v678_v45 }
 0xa4d   : > { %1678 = vtanh.f32 %v770_v54 }
 0xa4e   : > { %v779_v56 = vpop.permute.xlu1 %778 }
 0xa4f   : > { %v781_v60 = vmul.f32 %v1677_v50, %v779_v56 }
 0xa5a   : > { %v1679_v55 = vpop.eup %1678 }
 0xa5b   : > { %774 = vrot.lane.b32.xlu0 %v1679_v55, %s1718_s13 }
 0xacd   : > { %v775_v59 = vpop.permute.xlu0 %774 }
 0xace   : > { %v777_v61 = vmul.f32 %v775_v59, %v772_v57  ;;  %v1039_v59 = vstv %s2058_s11 }
 0xacf   : > { %vm2067_vm7 = vcmp.lt.s32.totalorder %v1039_v59, %v1791_v10 }
 0xad0   : > { %v1997_v3 = vadd.f32 %v781_v60, %v777_v61 }
 0xad2   : > { %v785_v4 = vsel %vm1993_vm5, %v1997_v3, %v779_v56  ;;  %v791_v9 = vsel %vm1993_vm5, %v1997_v3, 0.0 }
 0xad3   : > { %787 = vrot.lane.b32.xlu0 %v785_v4, %s1718_s13 }
 0xb45   : > { %v788_v11 = vpop.permute.xlu0 %787 }
 0xb46   : > { %790 = vst.msk [vmem:[#allocation2] sm:$0xff] %vm273_vm0, %v788_v11 }
 0xb4d   : > { %v807_v12 = vld [vmem:[#allocation2] sm:$0xff] }
 0xb4e   : > { %1605 = vmatmul.mubr.msk.f32.vlgmr.msra.gmra.mxu0 %vm273_vm0, %v807_v12 }
 0xb4f   : > { %1619 = vmatpush3.msra.mxu0 %v1789_v8  ;;  %1626 = vmatprep.mubr.msk.f32.mxu0 %vm1715_vm1, %v1713_v2 }
 0xb50   : > { %1620 = vmatprep.subr.mxu0 %v1713_v2 }
 0xb51   : > { %1621 = vmatpush3.msra.mxu0 %v1787_v7 }
 0xb52   : > { %1622 = vmatprep.subr.mxu0 %v1713_v2 }
 0xb53   : > { %1623 = vmatpush3.msra.mxu0 %v1785_v6 }
 0xb54   : > { %1624 = vmatprep.subr.mxu0 %v1713_v2 }
 0xb55   : > { %1625 = vmatpush3.msra.mxu0 %v1783_v5 }
 0xc0e   : > { %v877_v14 = vpop.f32.mrf.mxu0 }
 0xc0f   : > { %v888_v15 = vadd.f32 %v877_v14, %v1860_v13  ;;  %v881_v19 = vadd.f32 %v877_v14, %v806_v18 }
 0xc10   : > { %v1606_v16 = vpop.f32.mrf.mxu0 }
 0xc11   : > { %890 = vrot.lane.b32.xlu1 %v888_v15, %s1716_s7  ;;  %v1485_v20 = vmul.f32 -1.442695, %v881_v19 }
 0xc13   : > { %1680 = vpow2.f32 %v1485_v20 }
 0xc20   : > { %v1681_v21 = vpop.eup %1680 }
 0xc21   : > { %v885_v22 = vadd.f32 1.0, %v1681_v21  ;;  %v1061_v21 = vld [vmem:[%s1060_s23] sm:$0xf]  ;;  %s1177_s23 = scalar_lea.vmem %s2202_s4, %s1494_s15  ;;  %s1498_s15 = sshll.u32 %s2110_s26, 3 }
 0xc22   : > { %s1305_s22 = scalar_lea.vmem %s2202_s4, %s1498_s15 }
 0xc23   : > { %1682 = vrcp.f32 %v885_v22  ;;  %v1062_v22 = vunpack.c.l.bf16 %v1061_v21 }
 0xc30   : > { %v1683_v23 = vpop.eup %1682 }
 0xc31   : > { %v900_v30 = vsub.f32 1.0, %v1683_v23 }
 0xc83   : > { %v891_v24 = vpop.permute.xlu1 %890 }
 0xc84   : > { %v893_v25 = vmul.f32 %v1683_v23, %v891_v24 }
 0xc86   : > { %895 = vrot.lane.b32.xlu0 %v893_v25, %s1716_s7 }
 0xc8a   : > { %906 = vrot.lane.b32.xlu0 %v807_v12, %s1717_s8 }
 0xcf8   : > { %v896_v26 = vpop.permute.xlu0 %895 }
 0xcf9   : > { %v898_v27 = vadd.f32 %v896_v26, %v806_v18 }
 0xcfb   : > { %1684 = vtanh.f32 %v898_v27 }
 0xcfc   : > { %v907_v29 = vpop.permute.xlu0 %906 }
 0xcfd   : > { %v909_v39 = vmul.f32 %v1683_v23, %v907_v29 }
 0xd08   : > { %v1685_v28 = vpop.eup %1684 }
 0xd09   : > { %902 = vrot.lane.b32.xlu1 %v1685_v28, %s1718_s13 }
 0xd7b   : > { %v903_v34 = vpop.permute.xlu1 %902 }
 0xd7c   : > { %v905_v40 = vmul.f32 %v903_v34, %v900_v30 }
 0xd7e   : > { %v2034_v42 = vadd.f32 %v909_v39, %v905_v40 }
 0xd80   : > { %v913_v43 = vsel %vm2030_vm6, %v2034_v42, %v907_v29  ;;  %v919_v44 = vsel %vm2030_vm6, %v2034_v42, 0.0 }
 0xd81   : > { %915 = vrot.lane.b32.xlu1 %v913_v43, %s1718_s13  ;;  %v1167_v43 = vstv %s2086_s21 }
 0xd82   : > { %vm2095_vm8 = vcmp.lt.s32.totalorder %v1167_v43, %v1791_v10 }
 0xdf3   : > { %v916_v45 = vpop.permute.xlu1 %915 }
 0xdf4   : > { %918 = vst.msk [vmem:[#allocation2] sm:$0xff] %vm273_vm0, %v916_v45 }
 0xdfb   : > { %v935_v46 = vld [vmem:[#allocation2] sm:$0xff] }
 0xdfc   : > { %1616 = vmatmul.mubr.msk.f32.vlgmr.msra.gmra.mxu1 %vm273_vm0, %v935_v46 }
 0xdfd   : > { %1630 = vmatpush3.msra.mxu1 %v1789_v8  ;;  %1637 = vmatprep.mubr.msk.f32.mxu1 %vm1715_vm1, %v1713_v2 }
 0xdfe   : > { %1631 = vmatprep.subr.mxu1 %v1713_v2 }
 0xdff   : > { %1632 = vmatpush3.msra.mxu1 %v1787_v7  ;;  %v933_v7 = vld [vmem:[%s932_s17] sm:$0xf]  ;;  %s793_s17 = scalar_lea.vmem %s2202_s4, %s1481_s6 }
 0xe00   : > { %1633 = vmatprep.subr.mxu1 %v1713_v2  ;;  %v934_v8 = vunpack.c.l.bf16 %v933_v7 }
 0xe01   : > { %1634 = vmatpush3.msra.mxu1 %v1785_v6 }
 0xe02   : > { %1635 = vmatprep.subr.mxu1 %v1713_v2 }
 0xe03   : > { %1636 = vmatpush3.msra.mxu1 %v1783_v5 }
 0xebc   : > { %v1005_v47 = vpop.f32.mrf.mxu1 }
 0xebd   : > { %v1016_v48 = vadd.f32 %v1005_v47, %v1860_v13  ;;  %v1009_v50 = vadd.f32 %v1005_v47, %v934_v8 }
 0xebe   : > { %v1617_v49 = vpop.f32.mrf.mxu1 }
 0xebf   : > { %1018 = vrot.lane.b32.xlu0 %v1016_v48, %s1716_s7  ;;  %v1489_v6 = vmul.f32 -1.442695, %v1009_v50 }
 0xec1   : > { %1686 = vpow2.f32 %v1489_v6 }
 0xece   : > { %v1687_v2 = vpop.eup %1686 }
 0xecf   : > { %v1013_v5 = vadd.f32 1.0, %v1687_v2 }
 0xed1   : > { %1688 = vrcp.f32 %v1013_v5 }
 0xede   : > { %v1689_v51 = vpop.eup %1688 }
 0xedf   : > { %v1028_v58 = vsub.f32 1.0, %v1689_v51 }
 0xf31   : > { %v1019_v52 = vpop.permute.xlu0 %1018 }
 0xf32   : > { %v1021_v53 = vmul.f32 %v1689_v51, %v1019_v52  ;;  %v1189_v52 = vld [vmem:[%s1188_s30] sm:$0xf]  ;;  %s921_s30 = scalar_lea.vmem %s2202_s4, %s1486_s19 }
 0xf34   : > { %1023 = vrot.lane.b32.xlu1 %v1021_v53, %s1716_s7  ;;  %v1190_v53 = vunpack.c.l.bf16 %v1189_v52 }
 0xf38   : > { %1034 = vrot.lane.b32.xlu1 %v935_v46, %s1717_s8 }
 0xfa6   : > { %v1024_v54 = vpop.permute.xlu1 %1023 }
 0xfa7   : > { %v1026_v55 = vadd.f32 %v1024_v54, %v934_v8 }
 0xfa9   : > { %1690 = vtanh.f32 %v1026_v55 }
 0xfaa   : > { %v1035_v57 = vpop.permute.xlu1 %1034 }
 0xfab   : > { %v1037_v61 = vmul.f32 %v1689_v51, %v1035_v57 }
 0xfb6   : > { %v1691_v56 = vpop.eup %1690 }
 0xfb7   : > { %1030 = vrot.lane.b32.xlu0 %v1691_v56, %s1718_s13 }
0x1029   : > { %v1031_v60 = vpop.permute.xlu0 %1030 }
0x102a   : > { %v1033_v4 = vmul.f32 %v1031_v60, %v1028_v58 }
0x102c   : > { %v2071_v12 = vadd.f32 %v1037_v61, %v1033_v4 }
0x102e   : > { %v1041_v14 = vsel %vm2067_vm7, %v2071_v12, %v1035_v57  ;;  %v1047_v15 = vsel %vm2067_vm7, %v2071_v12, 0.0 }
0x102f   : > { %1043 = vrot.lane.b32.xlu0 %v1041_v14, %s1718_s13 }
0x10a1   : > { %v1044_v16 = vpop.permute.xlu0 %1043 }
0x10a2   : > { %1046 = vst.msk [vmem:[#allocation2] sm:$0xff] %vm273_vm0, %v1044_v16 }
0x10a9   : > { %v1063_v17 = vld [vmem:[#allocation2] sm:$0xff] }
0x10aa   : > { %1627 = vmatmul.mubr.msk.f32.vlgmr.msra.gmra.mxu0 %vm273_vm0, %v1063_v17 }
0x116a   : > { %v1133_v18 = vpop.f32.mrf.mxu0 }
0x116b   : > { %v1144_v19 = vadd.f32 %v1133_v18, %v1860_v13  ;;  %v1137_v23 = vadd.f32 %v1133_v18, %v1062_v22 }
0x116c   : > { %v1628_v20 = vpop.f32.mrf.mxu0 }
0x116d   : > { %1146 = vrot.lane.b32.xlu1 %v1144_v19, %s1716_s7  ;;  %v1493_v24 = vmul.f32 -1.442695, %v1137_v23 }
0x116f   : > { %1692 = vpow2.f32 %v1493_v24 }
0x117c   : > { %v1693_v25 = vpop.eup %1692 }
0x117d   : > { %v1141_v26 = vadd.f32 1.0, %v1693_v25 }
0x117f   : > { %1694 = vrcp.f32 %v1141_v26 }
0x118c   : > { %v1695_v27 = vpop.eup %1694 }
0x118d   : > { %v1156_v40 = vsub.f32 1.0, %v1695_v27 }
0x11df   : > { %v1147_v28 = vpop.permute.xlu1 %1146 }
0x11e0   : > { %v1149_v29 = vmul.f32 %v1695_v27, %v1147_v28 }
0x11e2   : > { %1151 = vrot.lane.b32.xlu0 %v1149_v29, %s1716_s7 }
0x11e6   : > { %1162 = vrot.lane.b32.xlu0 %v1063_v17, %s1717_s8 }
0x1254   : > { %v1152_v30 = vpop.permute.xlu0 %1151 }
0x1255   : > { %v1154_v31 = vadd.f32 %v1152_v30, %v1062_v22 }
0x1257   : > { %1696 = vtanh.f32 %v1154_v31 }
0x1258   : > { %v1163_v39 = vpop.permute.xlu0 %1162 }
0x1259   : > { %v1165_v46 = vmul.f32 %v1695_v27, %v1163_v39 }
0x1264   : > { %v1697_v34 = vpop.eup %1696 }
0x1265   : > { %1158 = vrot.lane.b32.xlu1 %v1697_v34, %s1718_s13 }
0x12d7   : > { %v1159_v45 = vpop.permute.xlu1 %1158 }
0x12d8   : > { %v1161_v47 = vmul.f32 %v1159_v45, %v1156_v40 }
0x12da   : > { %v1166_v49 = vadd.f32 %v1165_v46, %v1161_v47 }
0x12dc   : > { %v1169_v7 = vsel %vm2095_vm8, %v1166_v49, %v1163_v39  ;;  %v1175_v8 = vsel %vm2095_vm8, %v1166_v49, 0.0 }
0x12dd   : > { %1171 = vrot.lane.b32.xlu1 %v1169_v7, %s1718_s13 }
0x134f   : > { %v1172_v50 = vpop.permute.xlu1 %1171 }
0x1350   : > { %1174 = vst.msk [vmem:[#allocation2] sm:$0xff] %vm273_vm0, %v1172_v50 }
0x1357   : > { %v1191_v6 = vld [vmem:[#allocation2] sm:$0xff] }
0x1358   : > { %1638 = vmatmul.mubr.msk.f32.vlgmr.msra.gmra.mxu1 %vm273_vm0, %v1191_v6 }
0x1418   : > { %v1261_v2 = vpop.f32.mrf.mxu1 }
0x1419   : > { %v1272_v5 = vadd.f32 %v1261_v2, %v1860_v13  ;;  %v1265_v54 = vadd.f32 %v1261_v2, %v1190_v53 }
0x141a   : > { %v1639_v51 = vpop.f32.mrf.mxu1 }
0x141b   : > { %1274 = vrot.lane.b32.xlu0 %v1272_v5, %s1716_s7  ;;  %v1497_v55 = vmul.f32 -1.442695, %v1265_v54 }
0x141d   : > { %1698 = vpow2.f32 %v1497_v55 }
0x142a   : > { %v1699_v56 = vpop.eup %1698 }
0x142b   : > { %v1269_v57 = vadd.f32 1.0, %v1699_v56 }
0x142d   : > { %1700 = vrcp.f32 %v1269_v57 }
0x143a   : > { %v1701_v13 = vpop.eup %1700 }
0x143b   : > { %v1284_v19 = vsub.f32 1.0, %v1701_v13 }
0x148d   : > { %v1275_v58 = vpop.permute.xlu0 %1274 }
0x148e   : > { %v1277_v59 = vmul.f32 %v1701_v13, %v1275_v58 }
0x1490   : > { %1279 = vrot.lane.b32.xlu1 %v1277_v59, %s1716_s7  ;;  %s410_s7 = scalar_lea.vmem %s2202_s4, %s1468_s29 }
0x1494   : > { %1290 = vrot.lane.b32.xlu1 %v1191_v6, %s1717_s8  ;;  %s1477_s8 = sshll.u32 %s1946_s20, 3 }
0x1495   : > { %s665_s10 = scalar_lea.vmem %s2202_s4, %s1477_s8 }
0x1498   : > { %540 = vrot.lane.b32.xlu1 %v535_v1, %s1718_s13  ;;  %v538_v1 = vld [vmem:[%s537_s14] sm:$0xff] }
0x149c   : > { %796 = vrot.lane.b32.xlu1 %v791_v9, %s1718_s13  ;;  %v794_v9 = vld [vmem:[%s793_s17] sm:$0xff] }
0x14a0   : > { %924 = vrot.lane.b32.xlu1 %v919_v44, %s1718_s13 }
0x14a4   : > { %1180 = vrot.lane.b32.xlu1 %v1175_v8, %s1718_s13 }
0x1502   : > { %v1280_v60 = vpop.permute.xlu1 %1279 }
0x1503   : > { %v1282_v62 = vadd.f32 %v1280_v60, %v1190_v53 }
0x1505   : > { %1702 = vtanh.f32 %v1282_v62 }
0x1506   : > { %v1291_v63 = vpop.permute.xlu1 %1290 }
0x150a   : > { %v541_v0 = vpop.permute.xlu1 %540 }
0x150b   : > { %v543_v3 = vadd.f32 %v541_v0, %v538_v1 }
0x150d   : > { %544 = vst.msk [vmem:[%s537_s14] sm:$0xff] %vm273_vm0, %v543_v3 }
0x150e   : > { %v797_v41 = vpop.permute.xlu1 %796 }
0x150f   : > { %v799_v42 = vadd.f32 %v797_v41, %v794_v9 }
0x1511   : > { %800 = vst.msk [vmem:[%s793_s17] sm:$0xff] %vm273_vm0, %v799_v42  ;;  %s1049_s17 = scalar_lea.vmem %s2202_s4, %s1490_s9 }
0x1512   : > { %v1703_v44 = vpop.eup %1702  ;;  %v925_v61 = vpop.permute.xlu1 %924 }
0x1513   : > { %1286 = vrot.lane.b32.xlu0 %v1703_v44, %s1718_s13 }
0x1516   : > { %v1181_v14 = vpop.permute.xlu1 %1180 }
0x1517   : > { %413 = vrot.lane.b32.xlu0 %v408_v38, %s1718_s13  ;;  %v1293_v38 = vmul.f32 %v1701_v13, %v1291_v63 }
0x1518   : > { %v1178_v4 = vld [vmem:[%s1177_s23] sm:$0xff] }
0x1519   : > { %v1183_v16 = vadd.f32 %v1181_v14, %v1178_v4  ;;  %v922_v17 = vld [vmem:[%s921_s30] sm:$0xff] }
0x151a   : > { %v927_v18 = vadd.f32 %v925_v61, %v922_v17 }
0x151b   : > { %1184 = vst.msk [vmem:[%s1177_s23] sm:$0xff] %vm273_vm0, %v1183_v16  ;;  %668 = vrot.lane.b32.xlu0 %v663_v37, %s1718_s13 }
0x151c   : > { %928 = vst.msk [vmem:[%s921_s30] sm:$0xff] %vm273_vm0, %v927_v18 }
0x1523   : > { %v411_v21 = vld [vmem:[%s410_s7] sm:$0xff] }
0x1524   : > { %v666_v23 = vld [vmem:[%s665_s10] sm:$0xff] }
0x1585   : > { %v1287_v36 = vpop.permute.xlu0 %1286 }
0x1586   : > { %v1289_v20 = vmul.f32 %v1287_v36, %v1284_v19 }
0x1588   : > { %v1294_v22 = vadd.f32 %v1293_v38, %v1289_v20 }
0x1589   : > { %v414_v32 = vpop.permute.xlu0 %413 }
0x158a   : > { %v416_v33 = vadd.f32 %v414_v32, %v411_v21  ;;  %v1297_v37 = vsel %vm1296_vm9, %v1294_v22, %v1291_v63  ;;  %v1303_v10 = vsel %vm1296_vm9, %v1294_v22, 0.0 }
0x158b   : > { %1299 = vrot.lane.b32.xlu0 %v1297_v37, %s1718_s13 }
0x158c   : > { %417 = vst.msk [vmem:[%s410_s7] sm:$0xff] %vm273_vm0, %v416_v33 }
0x158d   : > { %v669_v24 = vpop.permute.xlu0 %668 }
0x158e   : > { %v671_v25 = vadd.f32 %v669_v24, %v666_v23 }
0x158f   : > { %1052 = vrot.lane.b32.xlu0 %v1047_v15, %s1718_s13 }
0x1590   : > { %672 = vst.msk [vmem:[%s665_s10] sm:$0xff] %vm273_vm0, %v671_v25 }
0x1593   : > { %1308 = vrot.lane.b32.xlu0 %v1303_v10, %s1718_s13 }
0x1597   : > { %v1050_v27 = vld [vmem:[%s1049_s17] sm:$0xff] }
0x15fd   : > { %v1300_v26 = vpop.permute.xlu0 %1299 }
0x15fe   : > { %1302 = vst.msk [vmem:[#allocation2] sm:$0xff] %vm273_vm0, %v1300_v26 }
0x1601   : > { %v1053_v11 = vpop.permute.xlu0 %1052 }
0x1602   : > { %v1055_v28 = vadd.f32 %v1053_v11, %v1050_v27 }
0x1604   : > { %1056 = vst.msk [vmem:[%s1049_s17] sm:$0xff] %vm273_vm0, %v1055_v28 }
0x1605   : > { %v1313_v12 = vld [vmem:[#allocation2] sm:$0xff]  ;;  %v1309_v29 = vpop.permute.xlu0 %1308 }
0x1606   : > { %1314 = vst.msk [vmem:[%s1781_s12] sm:$0xff] %vm273_vm0, %v1313_v12 }
0x160b   : > { %v1306_v15 = vld [vmem:[%s1305_s22] sm:$0xff] }
0x160c   : > { %v1311_v30 = vadd.f32 %v1309_v29, %v1306_v15 }
0x160e   : > { %1312 = vst.msk [vmem:[%s1305_s22] sm:$0xff] %vm273_vm0, %v1311_v30 }
0x160f PF: > { %s16_s18 = sadd.s32 1, %s1710_s18  }
0x1610   : > { %p13_p6 = scmp.ge.s32.totalorder %s16_s18, 4  }
0x1612   :  { %15 = sbr.rel (!%p13_p6) target bundleno = 1 (0x1), region = 100 }

</bundles_post_ra>
